<compile_context>
chip_gen: v5e
topology: v5e:2x2
jax: 0.10.0
libtpu: 0.0.40
codegen_flags: <defaults>
</compile_context>

<pallas_src>
import jax
import jax.numpy as jnp
from jax import lax
from jax.experimental import pallas as pl
from jax.experimental.pallas import tpu as pltpu


def _adaptive_bins(in_size, out_size):
    # PyTorch AdaptiveMaxPool2d bin boundaries: [floor(i*I/O), ceil((i+1)*I/O))
    return [(i * in_size // out_size, -((-(i + 1) * in_size) // out_size))
            for i in range(out_size)]


def _round_up(a, m):
    return ((a + m - 1) // m) * m


# ------------------------------- Pallas wrapper -------------------------------

def cnn_forward_pallas(x_nchw, params, block_b=None):
    N, Cin, H, W = x_nchw.shape
    n_out = params["fc_w"].shape[0]
    C1, C2, C3, C4 = (params["w1"].shape[0], params["w2"].shape[0],
                      params["w3"].shape[0], params["w4"].shape[0])

    # Static layer geometry (valid 3x3 convs, 2x2/stride-2 max pool).
    H1, W1 = H - 2, W - 2            # after conv1
    H2, W2 = H1 - 2, W1 - 2          # after conv2
    Hp, Wp = H2 // 2, W2 // 2        # after pool1 (torch floor semantics)
    H3, W3 = Hp - 2, Wp - 2          # after conv3
    H4, W4 = H3 - 2, W3 - 2          # after conv4 (adaptive-pool input)

    # --- batch block: big (amortize step overhead), >=2 blocks for v7x's 2 TCs.
    if block_b is None:
        block_b = 256                                   # fits 48 MiB scoped VMEM
    block_b = max(1, min(block_b, N))
    if N >= 16:
        block_b = min(block_b, _round_up(-(-N // 2), 8))
    if block_b < N and block_b % 8:
        block_b = _round_up(block_b, 8)                 # (8,128) rule on blocks
    n_blocks = -(-N // block_b)
    Np = n_blocks * block_b

    # --- block-Toeplitz weights, pre-split over kh: (3, W_in*Cin, W_out*Cout) --
    def row_conv_mats(w, w_in):
        """T[kh, w*cin+ci, j*cout+co] = w[co, ci, kh, w-j] (0 <= w-j < 3)."""
        w = w.astype(jnp.float32)
        cout, cin = w.shape[0], w.shape[1]
        w_out = w_in - 2
        t = jnp.zeros((3, w_in * cin, w_out * cout), jnp.float32)
        for kh in range(3):
            blk = jnp.transpose(w[:, :, kh, :], (2, 1, 0)).reshape(3 * cin, cout)
            for j in range(w_out):
                t = t.at[kh, j * cin:(j + 3) * cin,
                         j * cout:(j + 1) * cout].set(blk)
        return t

    def bias_row(b, w_out):
        return jnp.tile(b.astype(jnp.float32), (w_out,))[None, :]

    t1, b1r = row_conv_mats(params["w1"], W), bias_row(params["b1"], W1)

    # conv2: fold the 2x2 max-pool over W; columns laid out [even | pad | odd]
    # with the odd half starting at a lane-tile boundary.
    half = Wp * C2
    odd_off = _round_up(half, 128)
    t2f = row_conv_mats(params["w2"], W1).reshape(3, W1 * C1, W2, C2)
    even = t2f[:, :, 0:2 * Wp:2, :].reshape(3, W1 * C1, half)
    odd = t2f[:, :, 1:2 * Wp:2, :].reshape(3, W1 * C1, half)
    gap = jnp.zeros((3, W1 * C1, odd_off - half), jnp.float32)
    t2 = jnp.concatenate([even, gap, odd], axis=-1)      # (3, W1*C1, odd_off+half)
    b2h = jnp.tile(params["b2"].astype(jnp.float32), (Wp,))
    b2r = jnp.concatenate(
        [b2h, jnp.zeros((odd_off - half,), jnp.float32), b2h])[None, :]

    t3, b3r = row_conv_mats(params["w3"], Wp), bias_row(params["b3"], W3)
    t4, b4r = row_conv_mats(params["w4"], W3), bias_row(params["b4"], W4)

    # fc: torch flattens (C4,3,3) as c*9+i*3+j; kernel builds (i*3+j)*C4 + c.
    # Pad output columns to 128 lanes for an unmasked store.
    n_pad = _round_up(n_out, 128)
    fcw = jnp.transpose(
        params["fc_w"].astype(jnp.float32).T.reshape(C4, 3, 3, n_out),
        (1, 2, 0, 3)).reshape(9 * C4, n_out)
    fcw = jnp.pad(fcw, ((0, 0), (0, n_pad - n_out)))
    fcb = jnp.pad(params["fc_b"].astype(jnp.float32), (0, n_pad - n_out))[None, :]

    # bf16 MXU operands (accumulation stays f32 in-kernel).
    t1, t2, t3, t4, fcw = (a.astype(jnp.bfloat16) for a in (t1, t2, t3, t4, fcw))

    hb = _adaptive_bins(H4, 3)
    wb = _adaptive_bins(W4, 3)

    # Input: NCHW -> (H, N, W*Cin): batch on the sublane axis; bf16 halves DMA.
    x = jnp.transpose(x_nchw, (2, 0, 3, 1)).reshape(H, N, W * Cin)
    if Np != N:
        x = jnp.pad(x, ((0, 0), (0, Np - N), (0, 0)))
    x = x.astype(jnp.bfloat16)

    # --------------------------------- kernel ---------------------------------
    def kernel(x_ref, t1_ref, b1_ref, t2_ref, b2_ref, t3_ref, b3_ref,
               t4_ref, b4_ref, fcw_ref, fcb_ref, out_ref):

        def conv_relu6(h3d, t_ref, b_ref, h_out):
            # h3d: (h_in, B, K).  3 accumulated MXU dots, one per kh row shift.
            k = h3d.shape[-1]
            acc = None
            for kh in range(3):
                lhs = h3d[kh:kh + h_out].reshape(h_out * block_b, k)
                lhs = lhs.astype(jnp.bfloat16)
                d = jnp.dot(lhs, t_ref[kh], preferred_element_type=jnp.float32)
                acc = d if acc is None else acc + d
            out = jnp.minimum(jnp.maximum(acc + b_ref[...], 0.0), 6.0)
            return out.reshape(h_out, block_b, out.shape[-1])

        h = conv_relu6(x_ref[...], t1_ref, b1_ref, H1)    # (H1, B, W1*C1)
        h = conv_relu6(h, t2_ref, b2_ref, H2)             # (H2, B, odd_off+half)
        # 2x2/2 max pool: W halves are lane-tile aligned; H pairs on leading dim.
        h = jnp.maximum(h[:, :, :half], h[:, :, odd_off:odd_off + half])
        hr = h[:2 * Hp].reshape(Hp, 2, block_b, half)
        h = jnp.maximum(hr[:, 0], hr[:, 1])               # (Hp, B, Wp*C2)
        h = conv_relu6(h, t3_ref, b3_ref, H3)             # (H3, B, W3*C3)
        h = conv_relu6(h, t4_ref, b4_ref, H4)             # (H4, B, W4*C4)

        # AdaptiveMaxPool2d(3) fused with Linear(27, n_out): tiny maxes + 1 dot.
        feats = []
        for (hs, he) in hb:
            rmax = h[hs]
            for hi in range(hs + 1, he):
                rmax = jnp.maximum(rmax, h[hi])           # (B, W4*C4)
            for (ws, we) in wb:
                m = rmax[:, ws * C4:(ws + 1) * C4]
                for wi in range(ws + 1, we):
                    m = jnp.maximum(m, rmax[:, wi * C4:(wi + 1) * C4])
                feats.append(m)                           # (B, C4)
        pooled = jnp.concatenate(feats, axis=-1).astype(jnp.bfloat16)  # (B, 9*C4)
        out = jnp.dot(pooled, fcw_ref[...],
                      preferred_element_type=jnp.float32) + fcb_ref[...]
        out_ref[...] = out                                # lane-dense (B, n_pad)

    args = (x, t1, b1r, t2, b2r, t3, b3r, t4, b4r, fcw, fcb)

    def resident(a):   # full-array, VMEM-resident (constant block index)
        return pl.BlockSpec(a.shape, lambda n, _nd=a.ndim: (0,) * _nd)

    in_specs = [pl.BlockSpec((H, block_b, W * Cin), lambda n: (0, n, 0))]
    in_specs += [resident(a) for a in args[1:]]

    out = pl.pallas_call(
        kernel,
        out_shape=jax.ShapeDtypeStruct((Np, n_pad), jnp.float32),
        grid=(n_blocks,),
        in_specs=in_specs,
        out_specs=pl.BlockSpec((block_b, n_pad), lambda n: (n, 0)),
        compiler_params=pltpu.CompilerParams(
            dimension_semantics=("parallel",),
            vmem_limit_bytes=48 * 1024 * 1024),
    )(*args)
    return out[:N, :n_out]


# ------------------------- pure-JAX reference (check) -------------------------

def cnn_forward_ref(x, params):
    def conv(h, w, b):
        o = lax.conv_general_dilated(
            h, w, (1, 1), "VALID",
            dimension_numbers=("NCHW", "OIHW", "NCHW"),
            precision=lax.Precision.HIGHEST)
        return o + b[None, :, None, None]

    relu6 = lambda t: jnp.clip(t, 0.0, 6.0)
    h = relu6(conv(x, params["w1"], params["b1"]))
    h = relu6(conv(h, params["w2"], params["b2"]))
    h = lax.reduce_window(h, -jnp.inf, lax.max,
                          (1, 1, 2, 2), (1, 1, 2, 2), "VALID")
    h = relu6(conv(h, params["w3"], params["b3"]))
    h = relu6(conv(h, params["w4"], params["b4"]))
    N, C, Hc, Wc = h.shape
    hbins, wbins = _adaptive_bins(Hc, 3), _adaptive_bins(Wc, 3)
    pooled = jnp.stack(
        [jnp.stack([jnp.max(h[:, :, hs:he, ws:we], axis=(2, 3))
                    for (ws, we) in wbins], axis=-1)
         for (hs, he) in hbins], axis=-2)                  # (N, C, 3, 3)
    flat = pooled.reshape(N, -1)
    return flat @ params["fc_w"].T + params["fc_b"]


# ----------------------------------- main --------------------------------------

if __name__ == "__main__":
    key = jax.random.PRNGKey(0)
    ks = jax.random.split(key, 11)

    def u(k, shape, s):
        return jax.random.uniform(k, shape, jnp.float32, -s, s)

    params = {
        "w1": u(ks[0], (10, 3, 3, 3), 0.2),  "b1": u(ks[1], (10,), 0.2),
        "w2": u(ks[2], (10, 10, 3, 3), 0.1), "b2": u(ks[3], (10,), 0.1),
        "w3": u(ks[4], (10, 10, 3, 3), 0.1), "b3": u(ks[5], (10,), 0.1),
        "w4": u(ks[6], (3, 10, 3, 3), 0.1),  "b4": u(ks[7], (3,), 0.1),
        "fc_w": u(ks[8], (4, 27), 0.2),      "fc_b": u(ks[9], (4,), 0.2),
    }
    x = jax.random.normal(ks[10], (2, 3, 16, 16), jnp.float32)

    out = jax.block_until_ready(cnn_forward_pallas(x, params))
    ref = jax.block_until_ready(cnn_forward_ref(x, params))

    assert out.shape == (2, 4), out.shape
    # bf16 MXU operands -> slightly looser tolerance than pure-f32.
    assert jnp.allclose(out, ref, atol=2e-2, rtol=2e-2), (out, ref)

    print("KERNEL_OK")
</pallas_src>

<mosaic_0001>
module attributes {stable_mosaic.version = 11 : i64} {
  func.func @kernel(%arg0: i32, %arg1: memref<16x2x48xbf16, #tpu.memory_space<vmem>>, %arg2: memref<3x48x140xbf16, #tpu.memory_space<vmem>>, %arg3: memref<1x140xf32, #tpu.memory_space<vmem>>, %arg4: memref<3x140x188xbf16, #tpu.memory_space<vmem>>, %arg5: memref<1x188xf32, #tpu.memory_space<vmem>>, %arg6: memref<3x60x40xbf16, #tpu.memory_space<vmem>>, %arg7: memref<1x40xf32, #tpu.memory_space<vmem>>, %arg8: memref<3x40x6xbf16, #tpu.memory_space<vmem>>, %arg9: memref<1x6xf32, #tpu.memory_space<vmem>>, %arg10: memref<27x128xbf16, #tpu.memory_space<vmem>>, %arg11: memref<1x128xf32, #tpu.memory_space<vmem>>, %arg12: memref<2x128xf32, #tpu.memory_space<vmem>>) attributes {dimension_semantics = [#tpu.dimension_semantics<parallel>], iteration_bounds = array<i64: 1>, scalar_prefetch = 0 : i64, scratch_operands = 0 : i64, tpu.core_type = #tpu.core_type<tc>, window_params = [{transform_indices = @transform_0, window_bounds = array<i64: 16, 2, 48>}, {pipeline_mode = #tpu.pipeline_mode<synchronous>, transform_indices = @transform_1, window_bounds = array<i64: 3, 48, 140>}, {pipeline_mode = #tpu.pipeline_mode<synchronous>, transform_indices = @transform_2, window_bounds = array<i64: 1, 140>}, {pipeline_mode = #tpu.pipeline_mode<synchronous>, transform_indices = @transform_3, window_bounds = array<i64: 3, 140, 188>}, {pipeline_mode = #tpu.pipeline_mode<synchronous>, transform_indices = @transform_4, window_bounds = array<i64: 1, 188>}, {pipeline_mode = #tpu.pipeline_mode<synchronous>, transform_indices = @transform_5, window_bounds = array<i64: 3, 60, 40>}, {pipeline_mode = #tpu.pipeline_mode<synchronous>, transform_indices = @transform_6, window_bounds = array<i64: 1, 40>}, {pipeline_mode = #tpu.pipeline_mode<synchronous>, transform_indices = @transform_7, window_bounds = array<i64: 3, 40, 6>}, {pipeline_mode = #tpu.pipeline_mode<synchronous>, transform_indices = @transform_8, window_bounds = array<i64: 1, 6>}, {pipeline_mode = #tpu.pipeline_mode<synchronous>, transform_indices = @transform_9, window_bounds = array<i64: 27, 128>}, {pipeline_mode = #tpu.pipeline_mode<synchronous>, transform_indices = @transform_10, window_bounds = array<i64: 1, 128>}, {transform_indices = @transform_11, window_bounds = array<i64: 2, 128>}]} {
    %c0 = arith.constant 0 : index
    %c0_0 = arith.constant 0 : index
    %c0_1 = arith.constant 0 : index
    %0 = vector.load %arg1[%c0, %c0_0, %c0_1] : memref<16x2x48xbf16, #tpu.memory_space<vmem>>, vector<16x2x48xbf16>
    %1 = vector.extract_strided_slice %0 {offsets = [0, 0, 0], sizes = [14, 2, 48], strides = [1, 1, 1]} : vector<16x2x48xbf16> to vector<14x2x48xbf16>
    %2 = vector.shape_cast %1 : vector<14x2x48xbf16> to vector<28x48xbf16>
    %c0_2 = arith.constant 0 : index
    %c0_3 = arith.constant 0 : index
    %c0_4 = arith.constant 0 : index
    %3 = vector.load %arg2[%c0_2, %c0_3, %c0_4] : memref<3x48x140xbf16, #tpu.memory_space<vmem>>, vector<1x48x140xbf16>
    %4 = vector.shape_cast %3 : vector<1x48x140xbf16> to vector<48x140xbf16>
    %cst = arith.constant dense<0.000000e+00> : vector<28x140xf32>
    %5 = tpu.matmul %2, %4, %cst {dimension_numbers = #tpu.dot_dimension_numbers<[1], [0], [0], [1], [0, 0, 1, 1], [], []>} : vector<28x48xbf16>, vector<48x140xbf16>, vector<28x140xf32> -> vector<28x140xf32>
    %6 = vector.extract_strided_slice %0 {offsets = [1, 0, 0], sizes = [14, 2, 48], strides = [1, 1, 1]} : vector<16x2x48xbf16> to vector<14x2x48xbf16>
    %7 = vector.shape_cast %6 : vector<14x2x48xbf16> to vector<28x48xbf16>
    %c1 = arith.constant 1 : index
    %c0_5 = arith.constant 0 : index
    %c0_6 = arith.constant 0 : index
    %8 = vector.load %arg2[%c1, %c0_5, %c0_6] : memref<3x48x140xbf16, #tpu.memory_space<vmem>>, vector<1x48x140xbf16>
    %9 = vector.shape_cast %8 : vector<1x48x140xbf16> to vector<48x140xbf16>
    %cst_7 = arith.constant dense<0.000000e+00> : vector<28x140xf32>
    %10 = tpu.matmul %7, %9, %cst_7 {dimension_numbers = #tpu.dot_dimension_numbers<[1], [0], [0], [1], [0, 0, 1, 1], [], []>} : vector<28x48xbf16>, vector<48x140xbf16>, vector<28x140xf32> -> vector<28x140xf32>
    %11 = arith.addf %5, %10 : vector<28x140xf32>
    %12 = vector.extract_strided_slice %0 {offsets = [2, 0, 0], sizes = [14, 2, 48], strides = [1, 1, 1]} : vector<16x2x48xbf16> to vector<14x2x48xbf16>
    %13 = vector.shape_cast %12 : vector<14x2x48xbf16> to vector<28x48xbf16>
    %c2 = arith.constant 2 : index
    %c0_8 = arith.constant 0 : index
    %c0_9 = arith.constant 0 : index
    %14 = vector.load %arg2[%c2, %c0_8, %c0_9] : memref<3x48x140xbf16, #tpu.memory_space<vmem>>, vector<1x48x140xbf16>
    %15 = vector.shape_cast %14 : vector<1x48x140xbf16> to vector<48x140xbf16>
    %cst_10 = arith.constant dense<0.000000e+00> : vector<28x140xf32>
    %16 = tpu.matmul %13, %15, %cst_10 {dimension_numbers = #tpu.dot_dimension_numbers<[1], [0], [0], [1], [0, 0, 1, 1], [], []>} : vector<28x48xbf16>, vector<48x140xbf16>, vector<28x140xf32> -> vector<28x140xf32>
    %17 = arith.addf %11, %16 : vector<28x140xf32>
    %c0_11 = arith.constant 0 : index
    %c0_12 = arith.constant 0 : index
    %18 = vector.load %arg3[%c0_11, %c0_12] : memref<1x140xf32, #tpu.memory_space<vmem>>, vector<1x140xf32>
    %19 = vector.broadcast %18 : vector<1x140xf32> to vector<28x140xf32>
    %20 = arith.addf %17, %19 : vector<28x140xf32>
    %cst_13 = arith.constant 0.000000e+00 : f32
    %21 = vector.broadcast %cst_13 : f32 to vector<28x140xf32>
    %22 = arith.maximumf %20, %21 : vector<28x140xf32>
    %cst_14 = arith.constant 6.000000e+00 : f32
    %23 = vector.broadcast %cst_14 : f32 to vector<28x140xf32>
    %24 = arith.minimumf %22, %23 : vector<28x140xf32>
    %25 = vector.shape_cast %24 : vector<28x140xf32> to vector<14x2x140xf32>
    %26 = vector.extract_strided_slice %25 {offsets = [0, 0, 0], sizes = [12, 2, 140], strides = [1, 1, 1]} : vector<14x2x140xf32> to vector<12x2x140xf32>
    %27 = vector.shape_cast %26 : vector<12x2x140xf32> to vector<24x140xf32>
    %28 = arith.truncf %27 : vector<24x140xf32> to vector<24x140xbf16>
    %c0_15 = arith.constant 0 : index
    %c0_16 = arith.constant 0 : index
    %c0_17 = arith.constant 0 : index
    %29 = vector.load %arg4[%c0_15, %c0_16, %c0_17] : memref<3x140x188xbf16, #tpu.memory_space<vmem>>, vector<1x140x188xbf16>
    %30 = vector.shape_cast %29 : vector<1x140x188xbf16> to vector<140x188xbf16>
    %cst_18 = arith.constant dense<0.000000e+00> : vector<24x188xf32>
    %31 = tpu.matmul %28, %30, %cst_18 {dimension_numbers = #tpu.dot_dimension_numbers<[1], [0], [0], [1], [0, 0, 1, 1], [], []>} : vector<24x140xbf16>, vector<140x188xbf16>, vector<24x188xf32> -> vector<24x188xf32>
    %32 = vector.extract_strided_slice %25 {offsets = [1, 0, 0], sizes = [12, 2, 140], strides = [1, 1, 1]} : vector<14x2x140xf32> to vector<12x2x140xf32>
    %33 = vector.shape_cast %32 : vector<12x2x140xf32> to vector<24x140xf32>
    %34 = arith.truncf %33 : vector<24x140xf32> to vector<24x140xbf16>
    %c1_19 = arith.constant 1 : index
    %c0_20 = arith.constant 0 : index
    %c0_21 = arith.constant 0 : index
    %35 = vector.load %arg4[%c1_19, %c0_20, %c0_21] : memref<3x140x188xbf16, #tpu.memory_space<vmem>>, vector<1x140x188xbf16>
    %36 = vector.shape_cast %35 : vector<1x140x188xbf16> to vector<140x188xbf16>
    %cst_22 = arith.constant dense<0.000000e+00> : vector<24x188xf32>
    %37 = tpu.matmul %34, %36, %cst_22 {dimension_numbers = #tpu.dot_dimension_numbers<[1], [0], [0], [1], [0, 0, 1, 1], [], []>} : vector<24x140xbf16>, vector<140x188xbf16>, vector<24x188xf32> -> vector<24x188xf32>
    %38 = arith.addf %31, %37 : vector<24x188xf32>
    %39 = vector.extract_strided_slice %25 {offsets = [2, 0, 0], sizes = [12, 2, 140], strides = [1, 1, 1]} : vector<14x2x140xf32> to vector<12x2x140xf32>
    %40 = vector.shape_cast %39 : vector<12x2x140xf32> to vector<24x140xf32>
    %41 = arith.truncf %40 : vector<24x140xf32> to vector<24x140xbf16>
    %c2_23 = arith.constant 2 : index
    %c0_24 = arith.constant 0 : index
    %c0_25 = arith.constant 0 : index
    %42 = vector.load %arg4[%c2_23, %c0_24, %c0_25] : memref<3x140x188xbf16, #tpu.memory_space<vmem>>, vector<1x140x188xbf16>
    %43 = vector.shape_cast %42 : vector<1x140x188xbf16> to vector<140x188xbf16>
    %cst_26 = arith.constant dense<0.000000e+00> : vector<24x188xf32>
    %44 = tpu.matmul %41, %43, %cst_26 {dimension_numbers = #tpu.dot_dimension_numbers<[1], [0], [0], [1], [0, 0, 1, 1], [], []>} : vector<24x140xbf16>, vector<140x188xbf16>, vector<24x188xf32> -> vector<24x188xf32>
    %45 = arith.addf %38, %44 : vector<24x188xf32>
    %c0_27 = arith.constant 0 : index
    %c0_28 = arith.constant 0 : index
    %46 = vector.load %arg5[%c0_27, %c0_28] : memref<1x188xf32, #tpu.memory_space<vmem>>, vector<1x188xf32>
    %47 = vector.broadcast %46 : vector<1x188xf32> to vector<24x188xf32>
    %48 = arith.addf %45, %47 : vector<24x188xf32>
    %cst_29 = arith.constant 0.000000e+00 : f32
    %49 = vector.broadcast %cst_29 : f32 to vector<24x188xf32>
    %50 = arith.maximumf %48, %49 : vector<24x188xf32>
    %cst_30 = arith.constant 6.000000e+00 : f32
    %51 = vector.broadcast %cst_30 : f32 to vector<24x188xf32>
    %52 = arith.minimumf %50, %51 : vector<24x188xf32>
    %53 = vector.shape_cast %52 : vector<24x188xf32> to vector<12x2x188xf32>
    %54 = vector.extract_strided_slice %53 {offsets = [0, 0, 0], sizes = [12, 2, 60], strides = [1, 1, 1]} : vector<12x2x188xf32> to vector<12x2x60xf32>
    %55 = vector.extract_strided_slice %53 {offsets = [0, 0, 128], sizes = [12, 2, 60], strides = [1, 1, 1]} : vector<12x2x188xf32> to vector<12x2x60xf32>
    %56 = arith.maximumf %54, %55 : vector<12x2x60xf32>
    %57 = vector.shape_cast %56 : vector<12x2x60xf32> to vector<6x2x2x60xf32>
    %58 = vector.extract_strided_slice %57 {offsets = [0, 0, 0, 0], sizes = [6, 1, 2, 60], strides = [1, 1, 1, 1]} : vector<6x2x2x60xf32> to vector<6x1x2x60xf32>
    %59 = vector.shape_cast %58 : vector<6x1x2x60xf32> to vector<6x2x60xf32>
    %60 = vector.extract_strided_slice %57 {offsets = [0, 1, 0, 0], sizes = [6, 1, 2, 60], strides = [1, 1, 1, 1]} : vector<6x2x2x60xf32> to vector<6x1x2x60xf32>
    %61 = vector.shape_cast %60 : vector<6x1x2x60xf32> to vector<6x2x60xf32>
    %62 = arith.maximumf %59, %61 : vector<6x2x60xf32>
    %63 = vector.extract_strided_slice %62 {offsets = [0, 0, 0], sizes = [4, 2, 60], strides = [1, 1, 1]} : vector<6x2x60xf32> to vector<4x2x60xf32>
    %64 = vector.shape_cast %63 : vector<4x2x60xf32> to vector<8x60xf32>
    %65 = arith.truncf %64 : vector<8x60xf32> to vector<8x60xbf16>
    %c0_31 = arith.constant 0 : index
    %c0_32 = arith.constant 0 : index
    %c0_33 = arith.constant 0 : index
    %66 = vector.load %arg6[%c0_31, %c0_32, %c0_33] : memref<3x60x40xbf16, #tpu.memory_space<vmem>>, vector<1x60x40xbf16>
    %67 = vector.shape_cast %66 : vector<1x60x40xbf16> to vector<60x40xbf16>
    %cst_34 = arith.constant dense<0.000000e+00> : vector<8x40xf32>
    %68 = tpu.matmul %65, %67, %cst_34 {dimension_numbers = #tpu.dot_dimension_numbers<[1], [0], [0], [1], [0, 0, 1, 1], [], []>} : vector<8x60xbf16>, vector<60x40xbf16>, vector<8x40xf32> -> vector<8x40xf32>
    %69 = vector.extract_strided_slice %62 {offsets = [1, 0, 0], sizes = [4, 2, 60], strides = [1, 1, 1]} : vector<6x2x60xf32> to vector<4x2x60xf32>
    %70 = vector.shape_cast %69 : vector<4x2x60xf32> to vector<8x60xf32>
    %71 = arith.truncf %70 : vector<8x60xf32> to vector<8x60xbf16>
    %c1_35 = arith.constant 1 : index
    %c0_36 = arith.constant 0 : index
    %c0_37 = arith.constant 0 : index
    %72 = vector.load %arg6[%c1_35, %c0_36, %c0_37] : memref<3x60x40xbf16, #tpu.memory_space<vmem>>, vector<1x60x40xbf16>
    %73 = vector.shape_cast %72 : vector<1x60x40xbf16> to vector<60x40xbf16>
    %cst_38 = arith.constant dense<0.000000e+00> : vector<8x40xf32>
    %74 = tpu.matmul %71, %73, %cst_38 {dimension_numbers = #tpu.dot_dimension_numbers<[1], [0], [0], [1], [0, 0, 1, 1], [], []>} : vector<8x60xbf16>, vector<60x40xbf16>, vector<8x40xf32> -> vector<8x40xf32>
    %75 = arith.addf %68, %74 : vector<8x40xf32>
    %76 = vector.extract_strided_slice %62 {offsets = [2, 0, 0], sizes = [4, 2, 60], strides = [1, 1, 1]} : vector<6x2x60xf32> to vector<4x2x60xf32>
    %77 = vector.shape_cast %76 : vector<4x2x60xf32> to vector<8x60xf32>
    %78 = arith.truncf %77 : vector<8x60xf32> to vector<8x60xbf16>
    %c2_39 = arith.constant 2 : index
    %c0_40 = arith.constant 0 : index
    %c0_41 = arith.constant 0 : index
    %79 = vector.load %arg6[%c2_39, %c0_40, %c0_41] : memref<3x60x40xbf16, #tpu.memory_space<vmem>>, vector<1x60x40xbf16>
    %80 = vector.shape_cast %79 : vector<1x60x40xbf16> to vector<60x40xbf16>
    %cst_42 = arith.constant dense<0.000000e+00> : vector<8x40xf32>
    %81 = tpu.matmul %78, %80, %cst_42 {dimension_numbers = #tpu.dot_dimension_numbers<[1], [0], [0], [1], [0, 0, 1, 1], [], []>} : vector<8x60xbf16>, vector<60x40xbf16>, vector<8x40xf32> -> vector<8x40xf32>
    %82 = arith.addf %75, %81 : vector<8x40xf32>
    %c0_43 = arith.constant 0 : index
    %c0_44 = arith.constant 0 : index
    %83 = vector.load %arg7[%c0_43, %c0_44] : memref<1x40xf32, #tpu.memory_space<vmem>>, vector<1x40xf32>
    %84 = vector.broadcast %83 : vector<1x40xf32> to vector<8x40xf32>
    %85 = arith.addf %82, %84 : vector<8x40xf32>
    %cst_45 = arith.constant 0.000000e+00 : f32
    %86 = vector.broadcast %cst_45 : f32 to vector<8x40xf32>
    %87 = arith.maximumf %85, %86 : vector<8x40xf32>
    %cst_46 = arith.constant 6.000000e+00 : f32
    %88 = vector.broadcast %cst_46 : f32 to vector<8x40xf32>
    %89 = arith.minimumf %87, %88 : vector<8x40xf32>
    %90 = vector.shape_cast %89 : vector<8x40xf32> to vector<4x2x40xf32>
    %91 = vector.extract_strided_slice %90 {offsets = [0, 0, 0], sizes = [2, 2, 40], strides = [1, 1, 1]} : vector<4x2x40xf32> to vector<2x2x40xf32>
    %92 = vector.shape_cast %91 : vector<2x2x40xf32> to vector<4x40xf32>
    %93 = arith.truncf %92 : vector<4x40xf32> to vector<4x40xbf16>
    %c0_47 = arith.constant 0 : index
    %c0_48 = arith.constant 0 : index
    %c0_49 = arith.constant 0 : index
    %94 = vector.load %arg8[%c0_47, %c0_48, %c0_49] : memref<3x40x6xbf16, #tpu.memory_space<vmem>>, vector<1x40x6xbf16>
    %95 = vector.shape_cast %94 : vector<1x40x6xbf16> to vector<40x6xbf16>
    %cst_50 = arith.constant dense<0.000000e+00> : vector<4x6xf32>
    %96 = tpu.matmul %93, %95, %cst_50 {dimension_numbers = #tpu.dot_dimension_numbers<[1], [0], [0], [1], [0, 0, 1, 1], [], []>} : vector<4x40xbf16>, vector<40x6xbf16>, vector<4x6xf32> -> vector<4x6xf32>
    %97 = vector.extract_strided_slice %90 {offsets = [1, 0, 0], sizes = [2, 2, 40], strides = [1, 1, 1]} : vector<4x2x40xf32> to vector<2x2x40xf32>
    %98 = vector.shape_cast %97 : vector<2x2x40xf32> to vector<4x40xf32>
    %99 = arith.truncf %98 : vector<4x40xf32> to vector<4x40xbf16>
    %c1_51 = arith.constant 1 : index
    %c0_52 = arith.constant 0 : index
    %c0_53 = arith.constant 0 : index
    %100 = vector.load %arg8[%c1_51, %c0_52, %c0_53] : memref<3x40x6xbf16, #tpu.memory_space<vmem>>, vector<1x40x6xbf16>
    %101 = vector.shape_cast %100 : vector<1x40x6xbf16> to vector<40x6xbf16>
    %cst_54 = arith.constant dense<0.000000e+00> : vector<4x6xf32>
    %102 = tpu.matmul %99, %101, %cst_54 {dimension_numbers = #tpu.dot_dimension_numbers<[1], [0], [0], [1], [0, 0, 1, 1], [], []>} : vector<4x40xbf16>, vector<40x6xbf16>, vector<4x6xf32> -> vector<4x6xf32>
    %103 = arith.addf %96, %102 : vector<4x6xf32>
    %104 = vector.extract_strided_slice %90 {offsets = [2, 0, 0], sizes = [2, 2, 40], strides = [1, 1, 1]} : vector<4x2x40xf32> to vector<2x2x40xf32>
    %105 = vector.shape_cast %104 : vector<2x2x40xf32> to vector<4x40xf32>
    %106 = arith.truncf %105 : vector<4x40xf32> to vector<4x40xbf16>
    %c2_55 = arith.constant 2 : index
    %c0_56 = arith.constant 0 : index
    %c0_57 = arith.constant 0 : index
    %107 = vector.load %arg8[%c2_55, %c0_56, %c0_57] : memref<3x40x6xbf16, #tpu.memory_space<vmem>>, vector<1x40x6xbf16>
    %108 = vector.shape_cast %107 : vector<1x40x6xbf16> to vector<40x6xbf16>
    %cst_58 = arith.constant dense<0.000000e+00> : vector<4x6xf32>
    %109 = tpu.matmul %106, %108, %cst_58 {dimension_numbers = #tpu.dot_dimension_numbers<[1], [0], [0], [1], [0, 0, 1, 1], [], []>} : vector<4x40xbf16>, vector<40x6xbf16>, vector<4x6xf32> -> vector<4x6xf32>
    %110 = arith.addf %103, %109 : vector<4x6xf32>
    %c0_59 = arith.constant 0 : index
    %c0_60 = arith.constant 0 : index
    %111 = vector.load %arg9[%c0_59, %c0_60] : memref<1x6xf32, #tpu.memory_space<vmem>>, vector<1x6xf32>
    %112 = vector.broadcast %111 : vector<1x6xf32> to vector<4x6xf32>
    %113 = arith.addf %110, %112 : vector<4x6xf32>
    %cst_61 = arith.constant 0.000000e+00 : f32
    %114 = vector.broadcast %cst_61 : f32 to vector<4x6xf32>
    %115 = arith.maximumf %113, %114 : vector<4x6xf32>
    %cst_62 = arith.constant 6.000000e+00 : f32
    %116 = vector.broadcast %cst_62 : f32 to vector<4x6xf32>
    %117 = arith.minimumf %115, %116 : vector<4x6xf32>
    %118 = vector.shape_cast %117 : vector<4x6xf32> to vector<2x2x6xf32>
    %119 = vector.extract_strided_slice %118 {offsets = [0, 0, 0], sizes = [1, 2, 6], strides = [1, 1, 1]} : vector<2x2x6xf32> to vector<1x2x6xf32>
    %120 = vector.shape_cast %119 : vector<1x2x6xf32> to vector<2x6xf32>
    %121 = vector.extract_strided_slice %120 {offsets = [0, 0], sizes = [2, 3], strides = [1, 1]} : vector<2x6xf32> to vector<2x3xf32>
    %122 = vector.extract_strided_slice %120 {offsets = [0, 0], sizes = [2, 3], strides = [1, 1]} : vector<2x6xf32> to vector<2x3xf32>
    %123 = vector.extract_strided_slice %120 {offsets = [0, 3], sizes = [2, 3], strides = [1, 1]} : vector<2x6xf32> to vector<2x3xf32>
    %124 = arith.maximumf %122, %123 : vector<2x3xf32>
    %125 = vector.extract_strided_slice %120 {offsets = [0, 3], sizes = [2, 3], strides = [1, 1]} : vector<2x6xf32> to vector<2x3xf32>
    %126 = vector.extract_strided_slice %118 {offsets = [0, 0, 0], sizes = [1, 2, 6], strides = [1, 1, 1]} : vector<2x2x6xf32> to vector<1x2x6xf32>
    %127 = vector.shape_cast %126 : vector<1x2x6xf32> to vector<2x6xf32>
    %128 = vector.extract_strided_slice %118 {offsets = [1, 0, 0], sizes = [1, 2, 6], strides = [1, 1, 1]} : vector<2x2x6xf32> to vector<1x2x6xf32>
    %129 = vector.shape_cast %128 : vector<1x2x6xf32> to vector<2x6xf32>
    %130 = arith.maximumf %127, %129 : vector<2x6xf32>
    %131 = vector.extract_strided_slice %130 {offsets = [0, 0], sizes = [2, 3], strides = [1, 1]} : vector<2x6xf32> to vector<2x3xf32>
    %132 = vector.extract_strided_slice %130 {offsets = [0, 0], sizes = [2, 3], strides = [1, 1]} : vector<2x6xf32> to vector<2x3xf32>
    %133 = vector.extract_strided_slice %130 {offsets = [0, 3], sizes = [2, 3], strides = [1, 1]} : vector<2x6xf32> to vector<2x3xf32>
    %134 = arith.maximumf %132, %133 : vector<2x3xf32>
    %135 = vector.extract_strided_slice %130 {offsets = [0, 3], sizes = [2, 3], strides = [1, 1]} : vector<2x6xf32> to vector<2x3xf32>
    %136 = vector.extract_strided_slice %118 {offsets = [1, 0, 0], sizes = [1, 2, 6], strides = [1, 1, 1]} : vector<2x2x6xf32> to vector<1x2x6xf32>
    %137 = vector.shape_cast %136 : vector<1x2x6xf32> to vector<2x6xf32>
    %138 = vector.extract_strided_slice %137 {offsets = [0, 0], sizes = [2, 3], strides = [1, 1]} : vector<2x6xf32> to vector<2x3xf32>
    %139 = vector.extract_strided_slice %137 {offsets = [0, 0], sizes = [2, 3], strides = [1, 1]} : vector<2x6xf32> to vector<2x3xf32>
    %140 = vector.extract_strided_slice %137 {offsets = [0, 3], sizes = [2, 3], strides = [1, 1]} : vector<2x6xf32> to vector<2x3xf32>
    %141 = arith.maximumf %139, %140 : vector<2x3xf32>
    %142 = vector.extract_strided_slice %137 {offsets = [0, 3], sizes = [2, 3], strides = [1, 1]} : vector<2x6xf32> to vector<2x3xf32>
    %143 = tpu.concatenate %121, %124, %125, %131, %134, %135, %138, %141, %142 in 1 : vector<2x3xf32>, vector<2x3xf32>, vector<2x3xf32>, vector<2x3xf32>, vector<2x3xf32>, vector<2x3xf32>, vector<2x3xf32>, vector<2x3xf32>, vector<2x3xf32> -> vector<2x27xf32>
    %144 = arith.truncf %143 : vector<2x27xf32> to vector<2x27xbf16>
    %c0_63 = arith.constant 0 : index
    %c0_64 = arith.constant 0 : index
    %145 = vector.load %arg10[%c0_63, %c0_64] : memref<27x128xbf16, #tpu.memory_space<vmem>>, vector<27x128xbf16>
    %cst_65 = arith.constant dense<0.000000e+00> : vector<2x128xf32>
    %146 = tpu.matmul %144, %145, %cst_65 {dimension_numbers = #tpu.dot_dimension_numbers<[1], [0], [0], [1], [0, 0, 1, 1], [], []>} : vector<2x27xbf16>, vector<27x128xbf16>, vector<2x128xf32> -> vector<2x128xf32>
    %c0_66 = arith.constant 0 : index
    %c0_67 = arith.constant 0 : index
    %147 = vector.load %arg11[%c0_66, %c0_67] : memref<1x128xf32, #tpu.memory_space<vmem>>, vector<1x128xf32>
    %148 = vector.broadcast %147 : vector<1x128xf32> to vector<2x128xf32>
    %149 = arith.addf %146, %148 : vector<2x128xf32>
    %c0_68 = arith.constant 0 : index
    %c0_69 = arith.constant 0 : index
    %150 = vector.load %arg12[%c0_68, %c0_69] : memref<2x128xf32, #tpu.memory_space<vmem>>, vector<2x128xf32>
    tpu.vector_store %arg12[%c0_68, %c0_69], %149 {strides = array<i32>} : memref<2x128xf32, #tpu.memory_space<vmem>>, vector<2x128xf32>,
    return
  }
  func.func @transform_0(%arg0: i32) -> (i32, i32, i32) {
    %c0_i32 = arith.constant 0 : i32
    %c0_i32_0 = arith.constant 0 : i32
    %c0_i32_1 = arith.constant 0 : i32
    return %c0_i32, %arg0, %c0_i32_0 : i32, i32, i32
  }
  func.func @transform_1(%arg0: i32) -> (i32, i32, i32) {
    %c0_i32 = arith.constant 0 : i32
    %c0_i32_0 = arith.constant 0 : i32
    %c0_i32_1 = arith.constant 0 : i32
    %c0_i32_2 = arith.constant 0 : i32
    return %c0_i32, %c0_i32_0, %c0_i32_1 : i32, i32, i32
  }
  func.func @transform_2(%arg0: i32) -> (i32, i32) {
    %c0_i32 = arith.constant 0 : i32
    %c0_i32_0 = arith.constant 0 : i32
    %c0_i32_1 = arith.constant 0 : i32
    return %c0_i32, %c0_i32_0 : i32, i32
  }
  func.func @transform_3(%arg0: i32) -> (i32, i32, i32) {
    %c0_i32 = arith.constant 0 : i32
    %c0_i32_0 = arith.constant 0 : i32
    %c0_i32_1 = arith.constant 0 : i32
    %c0_i32_2 = arith.constant 0 : i32
    return %c0_i32, %c0_i32_0, %c0_i32_1 : i32, i32, i32
  }
  func.func @transform_4(%arg0: i32) -> (i32, i32) {
    %c0_i32 = arith.constant 0 : i32
    %c0_i32_0 = arith.constant 0 : i32
    %c0_i32_1 = arith.constant 0 : i32
    return %c0_i32, %c0_i32_0 : i32, i32
  }
  func.func @transform_5(%arg0: i32) -> (i32, i32, i32) {
    %c0_i32 = arith.constant 0 : i32
    %c0_i32_0 = arith.constant 0 : i32
    %c0_i32_1 = arith.constant 0 : i32
    %c0_i32_2 = arith.constant 0 : i32
    return %c0_i32, %c0_i32_0, %c0_i32_1 : i32, i32, i32
  }
  func.func @transform_6(%arg0: i32) -> (i32, i32) {
    %c0_i32 = arith.constant 0 : i32
    %c0_i32_0 = arith.constant 0 : i32
    %c0_i32_1 = arith.constant 0 : i32
    return %c0_i32, %c0_i32_0 : i32, i32
  }
  func.func @transform_7(%arg0: i32) -> (i32, i32, i32) {
    %c0_i32 = arith.constant 0 : i32
    %c0_i32_0 = arith.constant 0 : i32
    %c0_i32_1 = arith.constant 0 : i32
    %c0_i32_2 = arith.constant 0 : i32
    return %c0_i32, %c0_i32_0, %c0_i32_1 : i32, i32, i32
  }
  func.func @transform_8(%arg0: i32) -> (i32, i32) {
    %c0_i32 = arith.constant 0 : i32
    %c0_i32_0 = arith.constant 0 : i32
    %c0_i32_1 = arith.constant 0 : i32
    return %c0_i32, %c0_i32_0 : i32, i32
  }
  func.func @transform_9(%arg0: i32) -> (i32, i32) {
    %c0_i32 = arith.constant 0 : i32
    %c0_i32_0 = arith.constant 0 : i32
    %c0_i32_1 = arith.constant 0 : i32
    return %c0_i32, %c0_i32_0 : i32, i32
  }
  func.func @transform_10(%arg0: i32) -> (i32, i32) {
    %c0_i32 = arith.constant 0 : i32
    %c0_i32_0 = arith.constant 0 : i32
    %c0_i32_1 = arith.constant 0 : i32
    return %c0_i32, %c0_i32_0 : i32, i32
  }
  func.func @transform_11(%arg0: i32) -> (i32, i32) {
    %c0_i32 = arith.constant 0 : i32
    %c0_i32_0 = arith.constant 0 : i32
    return %arg0, %c0_i32 : i32, i32
  }
}

</mosaic_0001>

<bundles_post_ra>
// kernel: tpu_custom_call.1
= control target key start
LH: loop header
LB: loop body
LE: loop exit
PB: predicated region body
PF: predicated region fallthrough
CT: control target
= control target key end

     0   :  { %16 = vsyncpa [#allocation3], 0  ;;  %s3157_s0 = inlined_call_operand.vmem [shape: bf16[16,2,48], index: 0, kind: input, shape index: {}]   ;;  %s3158_s1 = inlined_call_operand.vmem [shape: bf16[3,48,140], index: 1, kind: input, shape index: {}]   ;;  %s3159_s2 = inlined_call_operand.hbm [shape: f32[1,140], index: 2, kind: input, shape index: {}]   ;;  %s3160_s3 = inlined_call_operand.hbm [shape: bf16[3,140,188], index: 3, kind: input, shape index: {}]   ;;  %s3161_s4 = inlined_call_operand.hbm [shape: f32[1,188], index: 4, kind: input, shape index: {}]   ;;  %s3162_s5 = inlined_call_operand.vmem [shape: bf16[3,60,40], index: 5, kind: input, shape index: {}]   ;;  %s3163_s6 = inlined_call_operand.hbm [shape: f32[1,40], index: 6, kind: input, shape index: {}]   ;;  %s3164_s7 = inlined_call_operand.vmem [shape: bf16[3,40,6], index: 7, kind: input, shape index: {}]   ;;  %s3165_s8 = inlined_call_operand.hbm [shape: f32[1,6], index: 8, kind: input, shape index: {}]   ;;  %s3166_s9 = inlined_call_operand.vmem [shape: bf16[27,128], index: 9, kind: input, shape index: {}]   ;;  %s3167_s10 = inlined_call_operand.hbm [shape: f32[1,128], index: 10, kind: input, shape index: {}]   ;;  %s3168_s11 = inlined_call_operand.hbm [shape: f32[2,128], index: 11, kind: output, shape index: {}]  }
   0x1   :  { %17 = vsyncpa [#allocation6], 0 }
   0x2   :  { %18 = vsyncpa [#allocation9], 0 }
   0x3   :  { %19 = vsyncpa [#allocation12], 0  ;;  %s40_s19 = sshll.u32 %s3160_s3, 4  ;;  %s41_s19 = int_to_ptr.hbm [resolvable:$true] %s40_s19 }
   0x4   :  { %20 = vsyncpa [#allocation4], 0  ;;  %s2560_s20 = smov [#allocation5]   ;;  %s67_s24 = sshll.u32 %s3163_s6, 4  ;;  %s68_s24 = int_to_ptr.hbm [resolvable:$true] %s67_s24 }
   0x5   :  { %s42_s21 = sshll.u32 %s2560_s20, 4  ;;  %s2561_s25 = smov 128   ;;  %s43_s21 = int_to_ptr.vmem [resolvable:$true] %s42_s21 }
   0x6   :  { %s2562_s26 = smov 8   ;;  %s2563_s27 = smov [#allocation8]  }
   0x7   :  { %48 = dma.hbm_to_vmem [thread:$0]  %s41_s19, 6912, %s43_s21, [#allocation6], %s2561_s25, %s2561_s25, %s2562_s26  }
   0x8   :  { %s69_s28 = sshll.u32 %s2563_s27, 4  ;;  %s30_s12 = sshll.u32 %s3159_s2, 4  ;;  %s70_s28 = int_to_ptr.vmem [resolvable:$true] %s69_s28  ;;  %s31_s12 = int_to_ptr.hbm [resolvable:$true] %s30_s12 }
   0x9   :  { %72 = dma.hbm_to_vmem [thread:$0]  %s68_s24, 16, %s70_s28, [#allocation9]  }
   0xa   :  { %s54_s14 = sshll.u32 %s3161_s4, 4  ;;  %s2564_s15 = smov [#allocation2]   ;;  %s55_s14 = int_to_ptr.hbm [resolvable:$true] %s54_s14 }
   0xb   :  { %s32_s16 = sshll.u32 %s2564_s15, 4  ;;  %s2565_s6 = smov [#allocation7]   ;;  %s33_s16 = int_to_ptr.vmem [resolvable:$true] %s32_s16 }
   0xc   :  { %35 = dma.hbm_to_vmem [thread:$0]  %s31_s12, 32, %s33_s16, [#allocation3]  }
   0xd   :  { %s56_s17 = sshll.u32 %s2565_s6, 4  ;;  %s80_s20 = sshll.u32 %s3165_s8, 4  ;;  %s57_s17 = int_to_ptr.vmem [resolvable:$true] %s56_s17  ;;  %s81_s20 = int_to_ptr.hbm [resolvable:$true] %s80_s20 }
   0xe   :  { %59 = dma.hbm_to_vmem [thread:$0]  %s55_s14, 32, %s57_s17, [#allocation6]  }
   0xf   :  { %s93_s22 = sshll.u32 %s3167_s10, 4  ;;  %s2566_s23 = smov [#allocation10]   ;;  %s94_s22 = int_to_ptr.hbm [resolvable:$true] %s93_s22 }
  0x10   :  { %s82_s4 = sshll.u32 %s2566_s23, 4  ;;  %s2567_s24 = smov [#allocation11]   ;;  %s83_s4 = int_to_ptr.vmem [resolvable:$true] %s82_s4 }
  0x11   :  { %85 = dma.hbm_to_vmem [thread:$0]  %s81_s20, 16, %s83_s4, [#allocation9]  }
  0x12   :  { %s95_s25 = sshll.u32 %s2567_s24, 4  ;;  %s96_s25 = int_to_ptr.vmem [resolvable:$true] %s95_s25 }
  0x13   :  { %98 = dma.hbm_to_vmem [thread:$0]  %s94_s22, 16, %s96_s25, [#allocation12]  }
  0x14   :  { %2550 = dma.done.wait [#allocation3], 32  }
  0x15   :  { %2551 = vsyncadd [#allocation3], 4294967264 }
  0x16   :  { %2552 = dma.done.wait [#allocation6], 6944  }
  0x17   :  { %2553 = vsyncadd [#allocation6], 4294960352 }
  0x18   :  { %2554 = dma.done.wait [#allocation9], 32  }
  0x19   :  { %2555 = vsyncadd [#allocation9], 4294967264 }
  0x1a   :  { %2556 = dma.done.wait [#allocation12], 16  }
  0x1b   :  { %2557 = vsyncadd [#allocation12], 4294967280  ;;  %v1843_v0 = vld [vmem:[%s3158_s1 + $0x50] sm:$0xf]  ;;  %v2267_v1 = vld [vmem:[%s3158_s1 + $0x54] sm:$0xf0] }
  0x1c   :  { %v2266_v2 = vld [vmem:[%s3158_s1 + $0x54] sm:$0xf]  ;;  %v1844_v3 = vor.u32 %v2267_v1, %v1843_v0  ;;  %v1845_v4 = vld [vmem:[%s3158_s1 + $0x58] sm:$0xf0]  ;;  %v1835_v5 = vld [vmem:[%s3158_s1 + $0x40] sm:$0xf] }
  0x1d   :  { %v2265_v6 = vld [vmem:[%s3158_s1 + $0x44] sm:$0xf0]  ;;  %v1848_v7 = vor.u32 %v2266_v2, %v1845_v4  ;;  %v2264_v8 = vld [vmem:[%s3158_s1 + $0x44] sm:$0xf]  ;;  %v1837_v9 = vld [vmem:[%s3158_s1 + $0x48] sm:$0xf0] }
  0x1e   :  { %230 = vmatpush.bf16.msra.mxu0 %v1844_v3  ;;  %v1836_v10 = vor.u32 %v2265_v6, %v1835_v5  ;;  %v1827_v11 = vld [vmem:[%s3158_s1 + $0x30] sm:$0xf]  ;;  %v2263_v12 = vld [vmem:[%s3158_s1 + $0x34] sm:$0xf0]  ;;  %v1840_v13 = vor.u32 %v2264_v8, %v1837_v9  ;;  %v2262_v14 = vld [vmem:[%s3158_s1 + $0x34] sm:$0xf] }
  0x1f   :  { %249 = vmatpush.bf16.msra.mxu1 %v1848_v7  ;;  %v2690_v15 = vld [vmem:[%s3157_s0 + $0x1] sm:$0x1]  ;;  %v2695_v16 = vld [vmem:[%s3157_s0 + $0x2] sm:$0x1]  ;;  %v1829_v17 = vld [vmem:[%s3158_s1 + $0x38] sm:$0xf0]  ;;  %v1828_v22 = vor.u32 %v2263_v12, %v1827_v11 }
  0x20   :  { %v2703_v18 = vld [vmem:[%s3157_s0 + $0x3] sm:$0x1]  ;;  %v2708_v19 = vld [vmem:[%s3157_s0 + $0x4] sm:$0x1]  ;;  %v2713_v20 = vld [vmem:[%s3157_s0 + $0x5] sm:$0x1]  ;;  %v1832_v26 = vor.u32 %v2262_v14, %v1829_v17 }
  0x21   :  { %v2718_v21 = vld [vmem:[%s3157_s0 + $0x6] sm:$0x1]  ;;  %154 = vst [vmem:[#allocation1] ss:$9 sm:$0xff] %v2690_v15  ;;  %v2724_v23 = vld [vmem:[%s3157_s0 + $0x7] sm:$0x1] }
  0x22   :  { %231 = vmatpush.bf16.msra.mxu0 %v1836_v10  ;;  %157 = vst [vmem:[#allocation1 + $0x1] ss:$9 sm:$0xff] %v2695_v16  ;;  %v1871_v24 = vld [vmem:[%s3158_s1 + $0x20] sm:$0xf]  ;;  %v2261_v25 = vld [vmem:[%s3158_s1 + $0x24] sm:$0xf0] }
  0x23   :  { %250 = vmatpush.bf16.msra.mxu1 %v1840_v13  ;;  %v2736_v27 = vld [vmem:[%s3157_s0 + $0x8] sm:$0x1]  ;;  %160 = vst [vmem:[#allocation1 + $0x2] ss:$9 sm:$0xff] %v2703_v18  ;;  %v1872_v28 = vor.u32 %v2261_v25, %v1871_v24  ;;  %v2260_v29 = vld [vmem:[%s3158_s1 + $0x24] sm:$0xf] }
  0x24   :  { %v1873_v30 = vld [vmem:[%s3158_s1 + $0x28] sm:$0xf0]  ;;  %163 = vst [vmem:[#allocation1 + $0x3] ss:$9 sm:$0xff] %v2708_v19  ;;  %v2272_v32 = vld [vmem:[%s3158_s1 + $0x84] sm:$0xf] }
  0x25   :  { %v1876_v31 = vor.u32 %v2260_v29, %v1873_v30  ;;  %v1907_v33 = vld [vmem:[%s3158_s1 + $0x88] sm:$0xf0]  ;;  %166 = vst [vmem:[#allocation1 + $0x4] ss:$9 sm:$0xff] %v2713_v20  ;;  %326 = vmatpush.bf16.msra.mxu2 %v1872_v28  ;;  %v1905_v35 = vld [vmem:[%s3158_s1 + $0x80] sm:$0xf] }
  0x26   :  { %v1910_v34 = vor.u32 %v2272_v32, %v1907_v33  ;;  %v2273_v36 = vld [vmem:[%s3158_s1 + $0x84] sm:$0xf0]  ;;  %232 = vmatpush.bf16.msra.mxu0 %v1828_v22  ;;  %169 = vst [vmem:[#allocation1 + $0x5] ss:$9 sm:$0xff] %v2718_v21  ;;  %v1863_v38 = vld [vmem:[%s3158_s1 + $0x10] sm:$0xf] }
  0x27   :  { %345 = vmatpush.bf16.msra.mxu3 %v1876_v31  ;;  %v1906_v37 = vor.u32 %v2273_v36, %v1905_v35  ;;  %v2259_v39 = vld [vmem:[%s3158_s1 + $0x14] sm:$0xf0]  ;;  %251 = vmatpush.bf16.msra.mxu1 %v1832_v26  ;;  %172 = vst [vmem:[#allocation1 + $0x6] ss:$9 sm:$0xff] %v2724_v23  ;;  %v2258_v41 = vld [vmem:[%s3158_s1 + $0x14] sm:$0xf] }
  0x28   :  { %v1864_v40 = vor.u32 %v2259_v39, %v1863_v38  ;;  %v1865_v42 = vld [vmem:[%s3158_s1 + $0x18] sm:$0xf0]  ;;  %175 = vst [vmem:[#allocation1 + $0x7] ss:$9 sm:$0xff] %v2736_v27  ;;  %v1855_v44 = vld [vmem:[%s3158_s1] sm:$0xf] }
  0x29   :  { %v1868_v43 = vor.u32 %v2258_v41, %v1865_v42  ;;  %v2257_v45 = vld [vmem:[%s3158_s1 + $0x4] sm:$0xf0]  ;;  %v2256_v47 = vld [vmem:[%s3158_s1 + $0x4] sm:$0xf]  ;;  %v1857_v48 = vld [vmem:[%s3158_s1 + $0x8] sm:$0xf0] }
  0x2a   :  { %429 = vmatpush.bf16.msrb.mxu0 %v1906_v37  ;;  %327 = vmatpush.bf16.msra.mxu2 %v1864_v40  ;;  %v1856_v46 = vor.u32 %v2257_v45, %v1855_v44  ;;  %v1860_v49 = vor.u32 %v2256_v47, %v1857_v48  ;;  %vm220_vm0 = vcmask 392192   ;;  %v133_v50 = vld [vmem:[%s3157_s0 + $0x9] sm:$0x1]  ;;  %v2792_v51 = vld [vmem:[%s3157_s0 + $0xa] sm:$0x1]  ;;  %vm512_vm1 = vcmask 1041408  }
  0x2b   :  { %448 = vmatpush.bf16.msrb.mxu1 %v1910_v34  ;;  %346 = vmatpush.bf16.msra.mxu3 %v1868_v43  ;;  %v2797_v53 = vld [vmem:[%s3157_s0 + $0xb] sm:$0x1]  ;;  %v2802_v54 = vld [vmem:[%s3157_s0 + $0xc] sm:$0x1]  ;;  %v137_v55 = vld [vmem:[%s3157_s0 + $0xd] sm:$0x1] }
  0x2c   :  { %v138_v56 = vld [vmem:[%s3157_s0 + $0xe] sm:$0x1]  ;;  %v2270_v57 = vld [vmem:[%s3158_s1 + $0x74] sm:$0xf]  ;;  %v1899_v58 = vld [vmem:[%s3158_s1 + $0x78] sm:$0xf0] }
  0x2d   :  { %v1902_v59 = vor.u32 %v2270_v57, %v1899_v58  ;;  %v1897_v60 = vld [vmem:[%s3158_s1 + $0x70] sm:$0xf]  ;;  %v2271_v61 = vld [vmem:[%s3158_s1 + $0x74] sm:$0xf0]  ;;  %v2268_v63 = vld [vmem:[%s3158_s1 + $0x64] sm:$0xf] }
  0x2e   :  { %328 = vmatpush.bf16.msra.mxu2 %v1856_v46  ;;  %v1898_v62 = vor.u32 %v2271_v61, %v1897_v60  ;;  %v1891_v0 = vld [vmem:[%s3158_s1 + $0x68] sm:$0xf0]  ;;  %v1889_v2 = vld [vmem:[%s3158_s1 + $0x60] sm:$0xf]  ;;  %v2269_v3 = vld [vmem:[%s3158_s1 + $0x64] sm:$0xf0] }
  0x2f   :  { %347 = vmatpush.bf16.msra.mxu3 %v1860_v49  ;;  %v176_v52 = vld [vmem:[#allocation1] sm:$0xff]  ;;  %449 = vmatpush.bf16.msrb.mxu1 %v1902_v59  ;;  %v1894_v1 = vor.u32 %v2268_v63, %v1891_v0  ;;  %v1890_v4 = vor.u32 %v2269_v3, %v1889_v2  ;;  %v139_v10 = vld [vmem:[%s3157_s0 + $0xf] sm:$0x1]  ;;  %v1973_v22 = vld [vmem:[#allocation5 + $0x100] sm:$0xf]  ;;  %vm514_vm2 = vcmask 1043458  }
  0x30   :  { %1849 = vmatmul.msk.bf16.vlgmr.msra.gmra.mxu0 %vm220_vm0, %v176_v52  ;;  %1851 = vmatmul.msk.bf16.vlgmr.msra.gmra.mxu1 %vm220_vm0, %v176_v52  ;;  %178 = vst [vmem:[#allocation1] ss:$9 sm:$0xff] %v133_v50  ;;  %v124_v5 = vld [vmem:[%s3157_s0] sm:$0x1]  ;;  %v2306_v24 = vld [vmem:[#allocation5 + $0x104] sm:$0xf] }
  0x31   :  { %180 = vst [vmem:[#allocation1 + $0x1] ss:$9 sm:$0xff] %v2792_v51  ;;  %430 = vmatpush.bf16.msrb.mxu0 %v1898_v62  ;;  %v1975_v26 = vld [vmem:[#allocation5 + $0x108] sm:$0xf0]  ;;  %v1965_v29 = vld [vmem:[#allocation5 + $0xf0] sm:$0xf] }
  0x32   :  { %182 = vst [vmem:[#allocation1 + $0x2] ss:$9 sm:$0xff] %v2797_v53  ;;  %v1978_v28 = vor.u32 %v2306_v24, %v1975_v26  ;;  %v2305_v30 = vld [vmem:[#allocation5 + $0xf4] sm:$0xf0]  ;;  %v2304_v31 = vld [vmem:[#allocation5 + $0xf4] sm:$0xf] }
  0x33   :  { %184 = vst [vmem:[#allocation1 + $0x3] ss:$9 sm:$0xff] %v2802_v54  ;;  %450 = vmatpush.bf16.msrb.mxu1 %v1894_v1  ;;  %v1966_v33 = vor.u32 %v2305_v30, %v1965_v29  ;;  %v1967_v34 = vld [vmem:[#allocation5 + $0xf8] sm:$0xf0]  ;;  %vm517_vm3 = vcmask 1045508   ;;  %vm520_vm4 = vcmask 1045504  }
  0x34   :  { %186 = vst [vmem:[#allocation1 + $0x4] ss:$9 sm:$0xff] %v137_v55  ;;  %v1970_v38 = vor.u32 %v2304_v31, %v1967_v34  ;;  %v2302_v57 = vld [vmem:[#allocation5 + $0xe4] sm:$0xf]  ;;  %v1959_v62 = vld [vmem:[#allocation5 + $0xe8] sm:$0xf0] }
  0x35   :  { %188 = vst [vmem:[#allocation1 + $0x5] ss:$9 sm:$0xff] %v138_v56  ;;  %431 = vmatpush.bf16.msrb.mxu0 %v1890_v4  ;;  %v1962_v63 = vor.u32 %v2302_v57, %v1959_v62  ;;  %v2298_v31 = vld [vmem:[#allocation5 + $0xc4] sm:$0xf]  ;;  %v1943_v34 = vld [vmem:[#allocation5 + $0xc8] sm:$0xf0] }
  0x36   :  { %vm735_vm5 = vcmask 97280   ;;  %vm1397_vm6 = vcmask 490496   ;;  %vm1575_vm7 = vcmask 1043456   ;;  %vm1571_vm8 = vcmask 326656   ;;  %s2569_s4 = smov 3   ;;  %s2570_s24 = smov 9  }
  0x37   :  { %s2571_s25 = smov 12   ;;  %s2572_s8 = smov 18   ;;  %vm1779_vm9 = vcmask 1044480   ;;  %vm1740_vm10 = vcmask 23552   ;;  %vm1742_vm11 = vcmask 48128   ;;  %vm1744_vm12 = vcmask 72704  }
  0x38   :  { %s2573_s26 = smov 21   ;;  %vm1747_vm13 = vcmask 121856   ;;  %vm1749_vm14 = vcmask 146432   ;;  %vm1751_vm15 = vcmask 171008   ;;  %s1806_s3 = sshll.u32 %s3168_s11, 4  ;;  %s1807_s3 = int_to_ptr.hbm [resolvable:$true] %s1806_s3 }
  0x39   :  { %784 = vmatpush.bf16.msra.mxu0 %v1978_v28 }
  0x3c   :  { %v189_v6 = vld [vmem:[#allocation1] sm:$0xff] }
  0x3d   :  { %264 = vst [vmem:[#allocation1] ss:$9 sm:$0xff] %v124_v5  ;;  %785 = vmatpush.bf16.msra.mxu0 %v1970_v38 }
  0x3e   :  { %266 = vst [vmem:[#allocation1 + $0x1] ss:$9 sm:$0xff] %v2690_v15 }
  0x3f   :  { %268 = vst [vmem:[#allocation1 + $0x2] ss:$9 sm:$0xff] %v2695_v16 }
  0x40   :  { %270 = vst [vmem:[#allocation1 + $0x3] ss:$9 sm:$0xff] %v2703_v18  ;;  %1850 = vmatmul.msk.bf16.gmra.mxu0 %vm220_vm0, %v189_v6  ;;  %1852 = vmatmul.msk.bf16.gmra.mxu1 %vm220_vm0, %v189_v6 }
  0x41   :  { %272 = vst [vmem:[#allocation1 + $0x4] ss:$9 sm:$0xff] %v2708_v19  ;;  %786 = vmatpush.bf16.msra.mxu0 %v1962_v63 }
  0x42   :  { %274 = vst [vmem:[#allocation1 + $0x5] ss:$9 sm:$0xff] %v2713_v20 }
  0x43   :  { %276 = vst [vmem:[#allocation1 + $0x6] ss:$9 sm:$0xff] %v2718_v21 }
  0x44   :  { %278 = vst [vmem:[#allocation1 + $0x7] ss:$9 sm:$0xff] %v2724_v23 }
  0x4b   :  { %v279_v7 = vld [vmem:[#allocation1] sm:$0xff] }
  0x4c   :  { %1877 = vmatmul.msk.bf16.vlgmr.msra.gmra.mxu2 %vm220_vm0, %v279_v7  ;;  %280 = vst [vmem:[#allocation1] ss:$9 sm:$0xff] %v2736_v27  ;;  %1879 = vmatmul.msk.bf16.vlgmr.msra.gmra.mxu3 %vm220_vm0, %v279_v7 }
  0x4d   :  { %281 = vst [vmem:[#allocation1 + $0x1] ss:$9 sm:$0xff] %v133_v50 }
  0x4e   :  { %282 = vst [vmem:[#allocation1 + $0x2] ss:$9 sm:$0xff] %v2792_v51 }
  0x4f   :  { %283 = vst [vmem:[#allocation1 + $0x3] ss:$9 sm:$0xff] %v2797_v53 }
  0x50   :  { %284 = vst [vmem:[#allocation1 + $0x4] ss:$9 sm:$0xff] %v2802_v54 }
  0x51   :  { %285 = vst [vmem:[#allocation1 + $0x5] ss:$9 sm:$0xff] %v137_v55 }
  0x58   :  { %v286_v8 = vld [vmem:[#allocation1] sm:$0xff] }
  0x59   :  { %366 = vst [vmem:[#allocation1] ss:$9 sm:$0xff] %v2695_v16 }
  0x5a   :  { %368 = vst [vmem:[#allocation1 + $0x1] ss:$9 sm:$0xff] %v2703_v18 }
  0x5b   :  { %370 = vst [vmem:[#allocation1 + $0x2] ss:$9 sm:$0xff] %v2708_v19 }
  0x5c   :  { %1878 = vmatmul.msk.bf16.gmra.mxu2 %vm220_vm0, %v286_v8  ;;  %372 = vst [vmem:[#allocation1 + $0x3] ss:$9 sm:$0xff] %v2713_v20  ;;  %1880 = vmatmul.msk.bf16.gmra.mxu3 %vm220_vm0, %v286_v8 }
  0x5d   :  { %374 = vst [vmem:[#allocation1 + $0x4] ss:$9 sm:$0xff] %v2718_v21 }
  0x5e   :  { %376 = vst [vmem:[#allocation1 + $0x5] ss:$9 sm:$0xff] %v2724_v23  ;;  %v2307_v23 = vld [vmem:[#allocation5 + $0x104] sm:$0xf0] }
  0x5f   :  { %378 = vst [vmem:[#allocation1 + $0x6] ss:$9 sm:$0xff] %v2736_v27  ;;  %v1974_v25 = vor.u32 %v2307_v23, %v1973_v22  ;;  %v470_v27 = vld [vmem:[#allocation2] sm:$0x3] }
  0x60   :  { %380 = vst [vmem:[#allocation1 + $0x7] ss:$9 sm:$0xff] %v133_v50  ;;  %v2884_v32 = vperm.slane %v470_v27, 0  ;;  %v2886_v37 = vperm.slane %v470_v27, 1  ;;  %v1941_v27 = vld [vmem:[#allocation5 + $0xc0] sm:$0xf] }
  0x61   :  { %748 = vmatpush.bf16.msrb.mxu2 %v1974_v25 }
  0x65   :  { %749 = vmatpush.bf16.msrb.mxu2 %v1966_v33 }
  0x67   :  { %v381_v9 = vld [vmem:[#allocation1] sm:$0xff] }
  0x68   :  { %1911 = vmatmul.msk.bf16.vlgmr.msrb.gmra.mxu0 %vm220_vm0, %v381_v9  ;;  %382 = vst [vmem:[#allocation1] ss:$9 sm:$0xff] %v2792_v51  ;;  %1913 = vmatmul.msk.bf16.vlgmr.msrb.gmra.mxu1 %vm220_vm0, %v381_v9 }
  0x69   :  { %383 = vst [vmem:[#allocation1 + $0x1] ss:$9 sm:$0xff] %v2797_v53 }
  0x6a   :  { %384 = vst [vmem:[#allocation1 + $0x2] ss:$9 sm:$0xff] %v2802_v54 }
  0x6b   :  { %385 = vst [vmem:[#allocation1 + $0x3] ss:$9 sm:$0xff] %v137_v55  ;;  %v1957_v55 = vld [vmem:[#allocation5 + $0xe0] sm:$0xf] }
  0x6c   :  { %386 = vst [vmem:[#allocation1 + $0x4] ss:$9 sm:$0xff] %v138_v56  ;;  %v2303_v56 = vld [vmem:[#allocation5 + $0xe4] sm:$0xf0] }
  0x6d   :  { %388 = vst [vmem:[#allocation1 + $0x5] ss:$9 sm:$0xff] %v139_v10  ;;  %v1958_v61 = vor.u32 %v2303_v56, %v1957_v55 }
  0x6f   :  { %750 = vmatpush.bf16.msrb.mxu2 %v1958_v61  ;;  %v1935_v61 = vld [vmem:[#allocation5 + $0xb8] sm:$0xf0] }
  0x74   :  { %v389_v11 = vld [vmem:[#allocation1] sm:$0xff] }
  0x78   :  { %1912 = vmatmul.msk.bf16.gmra.mxu0 %vm220_vm0, %v389_v11  ;;  %1914 = vmatmul.msk.bf16.gmra.mxu1 %vm220_vm0, %v389_v11  ;;  %v1949_v11 = vld [vmem:[#allocation5 + $0xd0] sm:$0xf]  ;;  %vm1753_vm0 = vcmask 195584  }
  0xad   :  { %v234_v12 = vpop.f32.mrf.mxu0  ;;  %v253_v13 = vpop.f32.mrf.mxu1 }
  0xb5   :  { %v236_v14 = vpop.f32.mrf.mxu0  ;;  %v255_v15 = vpop.f32.mrf.mxu1 }
  0xbd   :  { %v2876_v16 = vpop.f32.mrf.mxu0  ;;  %v2878_v17 = vpop.f32.mrf.mxu1 }
  0xc5   :  { %v2880_v18 = vpop.f32.mrf.mxu0  ;;  %v2882_v19 = vpop.f32.mrf.mxu1 }
  0xcf   :  { %v330_v20 = vpop.f32.mrf.mxu2  ;;  %v349_v21 = vpop.f32.mrf.mxu3 }
  0xd0   :  { %v331_v35 = vadd.f32 %v330_v20, %v234_v12  ;;  %v350_v36 = vadd.f32 %v349_v21, %v253_v13  ;;  %v2301_v12 = vld [vmem:[#allocation5 + $0xd4] sm:$0xf0]  ;;  %v2300_v13 = vld [vmem:[#allocation5 + $0xd4] sm:$0xf]  ;;  %v1951_v20 = vld [vmem:[#allocation5 + $0xd8] sm:$0xf0] }
  0xd1   :  { %v1954_v24 = vor.u32 %v2300_v13, %v1951_v20  ;;  %v2293_v13 = vld [vmem:[#allocation5 + $0x94] sm:$0xf0]  ;;  %v2292_v20 = vld [vmem:[#allocation5 + $0x94] sm:$0xf] }
  0xd3   :  { %787 = vmatpush.bf16.msra.mxu0 %v1954_v24 }
  0xd7   :  { %v332_v41 = vpop.f32.mrf.mxu2  ;;  %v351_v44 = vpop.f32.mrf.mxu3 }
  0xd8   :  { %v333_v49 = vadd.f32 %v332_v41, %v236_v14  ;;  %v352_v50 = vadd.f32 %v351_v44, %v255_v15  ;;  %v1950_v15 = vor.u32 %v2301_v12, %v1949_v11  ;;  %v2309_v41 = vld [vmem:[#allocation5 + $0x114] sm:$0x30]  ;;  %v1917_v12 = vld [vmem:[#allocation5 + $0x90] sm:$0xf] }
  0xda   :  { %751 = vmatpush.bf16.msrb.mxu2 %v1950_v15  ;;  %v1918_v15 = vor.u32 %v2293_v13, %v1917_v12  ;;  %v2281_v13 = vld [vmem:[#allocation5 + $0x34] sm:$0xf0] }
  0xdf   :  { %v335_v4 = vpop.f32.mrf.mxu2  ;;  %v354_v8 = vpop.f32.mrf.mxu3 }
  0xe0   :  { %v336_v14 = vadd.f32 %v335_v4, %v2876_v16  ;;  %v355_v21 = vadd.f32 %v354_v8, %v2878_v17  ;;  %v2299_v16 = vld [vmem:[#allocation5 + $0xc4] sm:$0xf0]  ;;  %v1946_v17 = vor.u32 %v2298_v31, %v1943_v34  ;;  %v1927_v4 = vld [vmem:[#allocation5 + $0xa8] sm:$0xf0]  ;;  %v2049_v34 = vld [vmem:[#allocation5 + $0x70] sm:$0xf] }
  0xe1   :  { %v1942_v33 = vor.u32 %v2299_v16, %v1941_v27 }
  0xe2   :  { %788 = vmatpush.bf16.msra.mxu0 %v1946_v17 }
  0xe3   :  { %752 = vmatpush.bf16.msrb.mxu2 %v1942_v33 }
  0xe5   :  { %v433_v39 = vpop.f32.mrf.mxu0  ;;  %v452_v40 = vpop.f32.mrf.mxu1 }
  0xe6   :  { %v462_v42 = vadd.f32 %v433_v39, %v331_v35  ;;  %v463_v43 = vadd.f32 %v452_v40, %v350_v36  ;;  %v1981_v40 = vld [vmem:[#allocation5 + $0x110] sm:$0xf] }
  0xe8   :  { %v476_v45 = vadd.f32 %v2884_v32, %v462_v42  ;;  %v477_v46 = vadd.f32 %v2886_v37, %v463_v43  ;;  %v2308_v42 = vld [vmem:[#allocation5 + $0x114] sm:$0xf] }
  0xea   :  { %v484_v47 = vmax.f32 %v476_v45, 0.0  ;;  %v485_v48 = vmax.f32 %v477_v46, 0.0 }
  0xec   :  { %v492_v51 = vmin.f32 %v484_v47, 6.0  ;;  %v493_v52 = vmin.f32 %v485_v48, 6.0  ;;  %v1983_v47 = vld [vmem:[#allocation5 + $0x118] sm:$0x30]  ;;  %v1933_v48 = vld [vmem:[#allocation5 + $0xb0] sm:$0xf] }
  0xed   :  { %v435_v53 = vpop.f32.mrf.mxu0  ;;  %v454_v54 = vpop.f32.mrf.mxu1 }
  0xee   :  { %v508_v58 = vrot.slane %v493_v52, 6  ;;  %v464_v59 = vadd.f32 %v435_v53, %v333_v49  ;;  %v465_v60 = vadd.f32 %v454_v54, %v352_v50  ;;  %v2297_v49 = vld [vmem:[#allocation5 + $0xb4] sm:$0xf0]  ;;  %v1982_v53 = vor.u32 %v2309_v41, %v1981_v40  ;;  %v2288_v41 = vld [vmem:[#allocation5 + $0x74] sm:$0xf] }
  0xef   :  { %v1986_v54 = vor.u32 %v2308_v42, %v1983_v47  ;;  %v1934_v55 = vor.u32 %v2297_v49, %v1933_v48  ;;  %v2286_v49 = vld [vmem:[#allocation5 + $0x64] sm:$0xf] }
  0xf0   :  { %v513_v0 = vsel %vm512_vm1, %v492_v51, %v508_v58  ;;  %v2892_v1 = vsel %vm514_vm2, %v492_v51, %v508_v58  ;;  %v518_v2 = vsel %vm517_vm3, %v492_v51, %v508_v58  ;;  %v521_v3 = vsel %vm520_vm4, %v508_v58, %v492_v51  ;;  %v2296_v58 = vld [vmem:[#allocation5 + $0xb4] sm:$0xf] }
  0xf1   :  { %v516_v5 = vrot.slane %v2892_v1, 2  ;;  %v2897_v6 = vrot.slane %v518_v2, 4  ;;  %v2899_v7 = vrot.slane %v521_v3, 6  ;;  %540 = vst [vmem:[#allocation1] ss:$4 sm:$0xff] %v513_v0  ;;  %v478_v9 = vadd.f32 %v2884_v32, %v464_v59  ;;  %753 = vmatpush.bf16.msrb.mxu2 %v1934_v55 }
  0xf2   :  { %v479_v10 = vadd.f32 %v2886_v37, %v465_v60  ;;  %v743_v59 = vsel %vm520_vm4, %v1982_v53, 0  ;;  %v746_v60 = vsel %vm520_vm4, %v1986_v54, 0  ;;  %v1938_v63 = vor.u32 %v2296_v58, %v1935_v61  ;;  %v1925_v0 = vld [vmem:[#allocation5 + $0xa0] sm:$0xf]  ;;  %v2295_v2 = vld [vmem:[#allocation5 + $0xa4] sm:$0xf0] }
  0xf3   :  { %542 = vst [vmem:[#allocation1 + $0x1] ss:$4 sm:$0xff] %v516_v5  ;;  %v486_v22 = vmax.f32 %v478_v9, 0.0  ;;  %773 = vmatpush.bf16.msrb.mxu3 %v743_v59  ;;  %809 = vmatpush.bf16.msra.mxu1 %v746_v60  ;;  %v2294_v3 = vld [vmem:[#allocation5 + $0xa4] sm:$0xf] }
  0xf4   :  { %544 = vst [vmem:[#allocation1 + $0x2] ss:$4 sm:$0xff] %v2897_v6  ;;  %v487_v23 = vmax.f32 %v479_v10, 0.0  ;;  %789 = vmatpush.bf16.msra.mxu0 %v1938_v63  ;;  %v1926_v10 = vor.u32 %v2295_v2, %v1925_v0  ;;  %v1930_v11 = vor.u32 %v2294_v3, %v1927_v4  ;;  %v2043_v54 = vld [vmem:[#allocation5 + $0x68] sm:$0xf0] }
  0xf5   :  { %546 = vst [vmem:[#allocation1 + $0x3] ss:$4 sm:$0xff] %v2899_v7  ;;  %v438_v25 = vpop.f32.mrf.mxu0  ;;  %v457_v26 = vpop.f32.mrf.mxu1  ;;  %v494_v35 = vmin.f32 %v486_v22, 6.0  ;;  %v2285_v58 = vld [vmem:[#allocation5 + $0x54] sm:$0xf0] }
  0xf6   :  { %v495_v28 = vmin.f32 %v487_v23, 6.0  ;;  %v466_v29 = vadd.f32 %v438_v25, %v336_v14  ;;  %v467_v30 = vadd.f32 %v457_v26, %v355_v21  ;;  %v356_v14 = vpop.f32.mrf.mxu3  ;;  %v1919_v21 = vld [vmem:[#allocation5 + $0x98] sm:$0xf0]  ;;  %754 = vmatpush.bf16.msrb.mxu2 %v1926_v10  ;;  %v2284_v59 = vld [vmem:[#allocation5 + $0x54] sm:$0xf] }
  0xf7   :  { %v357_v16 = vadd.f32 %v356_v14, %v2882_v19  ;;  %v1922_v33 = vor.u32 %v2292_v20, %v1919_v21  ;;  %v2051_v19 = vld [vmem:[#allocation5 + $0x78] sm:$0xf0]  ;;  %v2025_v2 = vld [vmem:[#allocation5 + $0x40] sm:$0xf]  ;;  %v2283_v3 = vld [vmem:[#allocation5 + $0x44] sm:$0xf0] }
  0xf8   :  { %v509_v36 = vrot.slane %v495_v28, 6  ;;  %v480_v38 = vadd.f32 %v2884_v32, %v466_v29  ;;  %v481_v39 = vadd.f32 %v2886_v37, %v467_v30  ;;  %790 = vmatpush.bf16.msra.mxu0 %v1930_v11  ;;  %v2035_v60 = vld [vmem:[#allocation5 + $0x58] sm:$0xf0]  ;;  %v2026_v4 = vor.u32 %v2283_v3, %v2025_v2  ;;  %v2280_v14 = vld [vmem:[#allocation5 + $0x34] sm:$0xf] }
  0xf9   :  { %v2019_v20 = vld [vmem:[#allocation5 + $0x38] sm:$0xf0]  ;;  %v2327_v2 = vld [vmem:[#allocation5 + $0x1a4] sm:$0x30]  ;;  %v2324_v3 = vld [vmem:[#allocation5 + $0x194] sm:$0xf] }
  0xfa   :  { %v2912_v43 = vsel %vm512_vm1, %v494_v35, %v509_v36  ;;  %v524_v44 = vsel %vm514_vm2, %v494_v35, %v509_v36  ;;  %v526_v45 = vsel %vm517_vm3, %v494_v35, %v509_v36  ;;  %v528_v46 = vsel %vm520_vm4, %v509_v36, %v494_v35  ;;  %v2289_v35 = vld [vmem:[#allocation5 + $0x74] sm:$0xf0]  ;;  %755 = vmatpush.bf16.msrb.mxu2 %v1918_v15 }
  0xfb   :  { %v2917_v50 = vrot.slane %v524_v44, 2  ;;  %v2919_v51 = vrot.slane %v526_v45, 4  ;;  %v2921_v52 = vrot.slane %v528_v46, 6  ;;  %548 = vst [vmem:[#allocation1 + $0x20] ss:$4 sm:$0xff] %v2912_v43  ;;  %v488_v56 = vmax.f32 %v480_v38, 0.0 }
  0xfc   :  { %v489_v57 = vmax.f32 %v481_v39, 0.0  ;;  %v2929_v22 = vld.sshfl [vmem:[#allocation1] sm:$0xff pattern:$0x73625140]  ;;  %v2050_v38 = vor.u32 %v2289_v35, %v2049_v34  ;;  %v337_v39 = vpop.f32.mrf.mxu2  ;;  %791 = vmatpush.bf16.msra.mxu0 %v1922_v33  ;;  %v2054_v44 = vor.u32 %v2288_v41, %v2051_v19  ;;  %v2041_v45 = vld [vmem:[#allocation5 + $0x60] sm:$0xf] }
  0xfd   :  { %550 = vst [vmem:[#allocation1 + $0x21] ss:$4 sm:$0xff] %v2917_v50  ;;  %v496_v8 = vmin.f32 %v488_v56, 6.0  ;;  %v2931_v23 = vld.sshfl [vmem:[#allocation1 + $0x8] sm:$0xff pattern:$0x73625140]  ;;  %v459_v30 = vpop.f32.mrf.mxu1  ;;  %v440_v42 = vpop.f32.mrf.mxu0  ;;  %v338_v47 = vadd.f32 %v337_v39, %v2880_v18  ;;  %v2046_v56 = vor.u32 %v2286_v49, %v2043_v54 }
  0xfe   :  { %552 = vst [vmem:[#allocation1 + $0x22] ss:$4 sm:$0xff] %v2919_v51  ;;  %v497_v62 = vmin.f32 %v489_v57, 6.0  ;;  %v469_v40 = vadd.f32 %v459_v30, %v357_v16  ;;  %920 = vmatpush.bf16.msra.mxu2 %v2050_v38  ;;  %v2287_v46 = vld [vmem:[#allocation5 + $0x64] sm:$0xf0] }
  0xff   :  { %554 = vst [vmem:[#allocation1 + $0x23] ss:$4 sm:$0xff] %v2921_v52  ;;  %v2042_v48 = vor.u32 %v2287_v46, %v2041_v45  ;;  %v468_v55 = vadd.f32 %v440_v42, %v338_v47  ;;  %v2033_v57 = vld [vmem:[#allocation5 + $0x50] sm:$0xf]  ;;  %v2278_v16 = vld [vmem:[#allocation5 + $0x24] sm:$0xf] }
 0x100   :  { %v510_v9 = vrot.slane %v497_v62, 6  ;;  %v483_v53 = vadd.f32 %v2886_v37, %v469_v40  ;;  %956 = vmatpush.bf16.msrb.mxu0 %v2054_v44  ;;  %v2034_v18 = vor.u32 %v2285_v58, %v2033_v57  ;;  %v2038_v62 = vor.u32 %v2284_v59, %v2035_v60  ;;  %v2011_v33 = vld [vmem:[#allocation5 + $0x28] sm:$0xf0]  ;;  %v2291_v39 = vld [vmem:[#allocation5 + $0x84] sm:$0x30] }
 0x101   :  { %v482_v0 = vadd.f32 %v2884_v32, %v468_v55  ;;  %v2014_v40 = vor.u32 %v2278_v16, %v2011_v33  ;;  %v2290_v19 = vld [vmem:[#allocation5 + $0x84] sm:$0xf]  ;;  %v2059_v42 = vld [vmem:[#allocation5 + $0x88] sm:$0x30]  ;;  %v2001_v45 = vld [vmem:[#allocation5 + $0x10] sm:$0xf] }
 0x102   :  { %v2934_v24 = vsel %vm512_vm1, %v496_v8, %v510_v9  ;;  %v531_v25 = vsel %vm514_vm2, %v496_v8, %v510_v9  ;;  %v533_v26 = vsel %vm517_vm3, %v496_v8, %v510_v9  ;;  %v535_v27 = vsel %vm520_vm4, %v510_v9, %v496_v8  ;;  %921 = vmatpush.bf16.msra.mxu2 %v2042_v48  ;;  %v2282_v8 = vld [vmem:[#allocation5 + $0x44] sm:$0xf]  ;;  %v2027_v9 = vld [vmem:[#allocation5 + $0x48] sm:$0xf0]  ;;  %v2277_v46 = vld [vmem:[#allocation5 + $0x14] sm:$0xf0] }
 0x103   :  { %v2939_v28 = vrot.slane %v531_v25, 2  ;;  %v2941_v29 = vrot.slane %v533_v26, 4  ;;  %559 = vst [vmem:[#allocation1] ss:$4 sm:$0xff] %v2934_v24  ;;  %v2945_v31 = vrot.slane %v535_v27, 6  ;;  %v491_v61 = vmax.f32 %v483_v53, 0.0 }
 0x104   :  { %957 = vmatpush.bf16.msrb.mxu0 %v2046_v56  ;;  %v2030_v10 = vor.u32 %v2282_v8, %v2027_v9  ;;  %v490_v11 = vmax.f32 %v482_v0, 0.0  ;;  %v2022_v25 = vor.u32 %v2280_v14, %v2019_v20  ;;  %v2009_v26 = vld [vmem:[#allocation5 + $0x20] sm:$0xf]  ;;  %v2279_v27 = vld [vmem:[#allocation5 + $0x24] sm:$0xf0]  ;;  %v2002_v48 = vor.u32 %v2277_v46, %v2001_v45 }
 0x105   :  { %560 = vst [vmem:[#allocation1 + $0x1] ss:$4 sm:$0xff] %v2939_v28  ;;  %v2970_v32 = vmin.f32 %v491_v61, 6.0  ;;  %v2276_v49 = vld [vmem:[#allocation5 + $0x14] sm:$0xf] }
 0x106   :  { %v2947_v36 = vld.sshfl [vmem:[#allocation1 + $0x20] sm:$0xff pattern:$0x73625140]  ;;  %v2949_v17 = vld.sshfl [vmem:[#allocation1 + $0x28] sm:$0xff pattern:$0x73625140]  ;;  %922 = vmatpush.bf16.msra.mxu2 %v2034_v18 }
 0x107   :  { %561 = vst [vmem:[#allocation1 + $0x2] ss:$4 sm:$0xff] %v2941_v29  ;;  %v2974_v21 = vmin.f32 %v490_v11, 6.0  ;;  %v511_v30 = vrot.slane %v2970_v32, 6  ;;  %v2003_v54 = vld [vmem:[#allocation5 + $0x18] sm:$0xf0] }
 0x108   :  { %562 = vst [vmem:[#allocation1 + $0x3] ss:$4 sm:$0xff] %v2945_v31  ;;  %958 = vmatpush.bf16.msrb.mxu0 %v2038_v62  ;;  %v1993_v55 = vld [vmem:[#allocation5] sm:$0xf]  ;;  %v2006_v56 = vor.u32 %v2276_v49, %v2003_v54  ;;  %v2275_v57 = vld [vmem:[#allocation5 + $0x4] sm:$0xf0] }
 0x109   :  { %607 = vst [vmem:[#allocation1 + $0x23] ss:$4 sm:$0xff] %v2934_v24  ;;  %v2986_v44 = vsel %vm512_vm1, %v2974_v21, %v511_v30  ;;  %v2274_v58 = vld [vmem:[#allocation5 + $0x4] sm:$0xf]  ;;  %v1995_v18 = vld [vmem:[#allocation5 + $0x8] sm:$0xf0]  ;;  %v1994_v59 = vor.u32 %v2275_v57, %v1993_v55 }
 0x10a   :  { %601 = vst [vmem:[#allocation1 + $0x20] ss:$4 sm:$0xff] %v2917_v50  ;;  %923 = vmatpush.bf16.msra.mxu2 %v2026_v4  ;;  %v2125_v60 = vld [vmem:[#allocation5 + $0x190] sm:$0xf]  ;;  %v2325_v61 = vld [vmem:[#allocation5 + $0x194] sm:$0xf0]  ;;  %v1998_v8 = vor.u32 %v2274_v58, %v1995_v18 }
 0x10b   :  { %603 = vst [vmem:[#allocation1 + $0x21] ss:$4 sm:$0xff] %v2919_v51  ;;  %v2133_v62 = vld [vmem:[#allocation5 + $0x1a0] sm:$0xf]  ;;  %v2126_v0 = vor.u32 %v2325_v61, %v2125_v60  ;;  %v2127_v4 = vld [vmem:[#allocation5 + $0x198] sm:$0xf0] }
 0x10c   :  { %605 = vst [vmem:[#allocation1 + $0x22] ss:$4 sm:$0xff] %v2921_v52  ;;  %959 = vmatpush.bf16.msrb.mxu0 %v2030_v10  ;;  %v2134_v9 = vor.u32 %v2327_v2, %v2133_v62  ;;  %v2117_v10 = vld [vmem:[#allocation5 + $0x180] sm:$0xf]  ;;  %v2323_v11 = vld [vmem:[#allocation5 + $0x184] sm:$0xf0] }
 0x10d   :  { %v2119_v14 = vld [vmem:[#allocation5 + $0x188] sm:$0xf0]  ;;  %v2109_v33 = vld [vmem:[#allocation5 + $0x170] sm:$0xf]  ;;  %v2095_v49 = vld [vmem:[#allocation5 + $0x158] sm:$0xf0] }
 0x10e   :  { %v2315_v54 = vld [vmem:[#allocation5 + $0x144] sm:$0xf0]  ;;  %v2314_v55 = vld [vmem:[#allocation5 + $0x144] sm:$0xf]  ;;  %v2077_v58 = vld [vmem:[#allocation5 + $0x130] sm:$0xf] }
 0x10f   :  { %v2960_v63 = vld.sshfl [vmem:[#allocation1] sm:$0xff pattern:$0x73625140]  ;;  %v2962_v37 = vld.sshfl [vmem:[#allocation1 + $0x8] sm:$0xff pattern:$0x73625140] }
 0x110   :  { %593 = vst [vmem:[#allocation1] ss:$4 sm:$0xff] %v516_v5  ;;  %v2017_v5 = vld [vmem:[#allocation5 + $0x30] sm:$0xf]  ;;  %960 = vmatpush.bf16.msrb.mxu0 %v2022_v25  ;;  %v2118_v25 = vor.u32 %v2323_v11, %v2117_v10  ;;  %v2313_v18 = vld [vmem:[#allocation5 + $0x134] sm:$0xf0] }
 0x111   :  { %595 = vst [vmem:[#allocation1 + $0x1] ss:$4 sm:$0xff] %v2897_v6  ;;  %v2018_v15 = vor.u32 %v2281_v13, %v2017_v5  ;;  %v2135_v5 = vld [vmem:[#allocation5 + $0x1a8] sm:$0x30]  ;;  %v2322_v13 = vld [vmem:[#allocation5 + $0x184] sm:$0xf]  ;;  %v2078_v61 = vor.u32 %v2313_v18, %v2077_v58 }
 0x112   :  { %597 = vst [vmem:[#allocation1 + $0x2] ss:$4 sm:$0xff] %v2899_v7  ;;  %v2122_v16 = vor.u32 %v2322_v13, %v2119_v14  ;;  %v2079_v60 = vld [vmem:[#allocation5 + $0x138] sm:$0xf0]  ;;  %v2311_v2 = vld [vmem:[#allocation5 + $0x124] sm:$0xf0] }
 0x113   :  { %599 = vst [vmem:[#allocation1 + $0x3] ss:$4 sm:$0xff] %v2912_v43  ;;  %v610_v12 = vld.sshfl [vmem:[#allocation1 + $0x20] sm:$0xff pattern:$0x73625140]  ;;  %924 = vmatpush.bf16.msra.mxu2 %v2018_v15 }
 0x114   :  { %v611_v1 = vld.sshfl [vmem:[#allocation1 + $0x28] sm:$0xff pattern:$0x73625140]  ;;  %961 = vmatpush.bf16.msrb.mxu0 %v2014_v40  ;;  %v2319_v40 = vld [vmem:[#allocation5 + $0x164] sm:$0xf0] }
 0x115   :  { %1000 = vst [vmem:[#allocation1 + $0x20] ss:$4 sm:$0xff] %v2919_v51  ;;  %v2010_v51 = vor.u32 %v2279_v27, %v2009_v26  ;;  %v1141_v27 = vsel %vm520_vm4, %v2134_v9, 0 }
 0x116   :  { %1002 = vst [vmem:[#allocation1 + $0x21] ss:$4 sm:$0xff] %v2921_v52 }
 0x117   :  { %1004 = vst [vmem:[#allocation1 + $0x22] ss:$4 sm:$0xff] %v2934_v24  ;;  %v2057_v24 = vld [vmem:[#allocation5 + $0x80] sm:$0xf]  ;;  %925 = vmatpush.bf16.msra.mxu2 %v2010_v51 }
 0x118   :  { %1006 = vst [vmem:[#allocation1 + $0x23] ss:$4 sm:$0xff] %v2939_v28  ;;  %v2058_v41 = vor.u32 %v2291_v39, %v2057_v24  ;;  %962 = vmatpush.bf16.msrb.mxu0 %v2006_v56  ;;  %v2101_v39 = vld [vmem:[#allocation5 + $0x160] sm:$0xf]  ;;  %v2087_v56 = vld [vmem:[#allocation5 + $0x148] sm:$0xf0] }
 0x11a   :  { %v608_v52 = vld.sshfl [vmem:[#allocation1] sm:$0xff pattern:$0x73625140]  ;;  %v609_v34 = vld.sshfl [vmem:[#allocation1 + $0x8] sm:$0xff pattern:$0x73625140] }
 0x11b   :  { %612 = vst [vmem:[#allocation1] ss:$4 sm:$0xff] %v2939_v28  ;;  %v624_v35 = vpack.c.bf16 %v610_v12, %v608_v52  ;;  %v625_v38 = vpack.c.bf16 %v611_v1, %v609_v34  ;;  %v2062_v28 = vor.u32 %v2290_v19, %v2059_v42  ;;  %v915_v47 = vsel %vm520_vm4, %v2058_v41, 0  ;;  %926 = vmatpush.bf16.msra.mxu2 %v2002_v48  ;;  %v2326_v12 = vld [vmem:[#allocation5 + $0x1a4] sm:$0xf] }
 0x11c   :  { %613 = vst [vmem:[#allocation1 + $0x1] ss:$4 sm:$0xff] %v2941_v29  ;;  %945 = vmatpush.bf16.msra.mxu3 %v915_v47  ;;  %v2130_v1 = vor.u32 %v2324_v3, %v2127_v4  ;;  %v2138_v26 = vor.u32 %v2326_v12, %v2135_v5  ;;  %963 = vmatpush.bf16.msrb.mxu0 %v1998_v8  ;;  %v2321_v52 = vld [vmem:[#allocation5 + $0x174] sm:$0xf0]  ;;  %v2320_v34 = vld [vmem:[#allocation5 + $0x174] sm:$0xf] }
 0x11d   :  { %614 = vst [vmem:[#allocation1 + $0x2] ss:$4 sm:$0xff] %v2945_v31  ;;  %756 = vmatmul.bf16.vlgmr.msrb.gmra.mxu2 %v624_v35  ;;  %1987 = vmatmul.msk.bf16.vlgmr.msrb.gmra.mxu3 %vm735_vm5, %v625_v38  ;;  %v918_v53 = vsel %vm520_vm4, %v2062_v28, 0  ;;  %v2110_v24 = vor.u32 %v2321_v52, %v2109_v33  ;;  %v2103_v41 = vld [vmem:[#allocation5 + $0x168] sm:$0xf0]  ;;  %v2102_v19 = vor.u32 %v2319_v40, %v2101_v39 }
 0x11e   :  { %615 = vst [vmem:[#allocation1 + $0x3] ss:$4 sm:$0xff] %v2986_v44  ;;  %792 = vmatmul.bf16.vlgmr.msra.gmra.mxu0 %v624_v35  ;;  %1989 = vmatmul.msk.bf16.vlgmr.msra.gmra.mxu1 %vm735_vm5, %v625_v38  ;;  %v1144_v51 = vsel %vm520_vm4, %v2138_v26, 0  ;;  %v2093_v42 = vld [vmem:[#allocation5 + $0x150] sm:$0xf] }
 0x11f   :  { %981 = vmatpush.bf16.msrb.mxu1 %v918_v53  ;;  %927 = vmatpush.bf16.msra.mxu2 %v1994_v59  ;;  %v2317_v28 = vld [vmem:[#allocation5 + $0x154] sm:$0xf0]  ;;  %v2316_v48 = vld [vmem:[#allocation5 + $0x154] sm:$0xf]  ;;  %v2310_v3 = vld [vmem:[#allocation5 + $0x124] sm:$0xf] }
 0x120   :  { %1171 = vmatpush.bf16.msrb.mxu3 %v1141_v27  ;;  %1182 = vmatpush.bf16.msra.mxu0 %v2130_v1  ;;  %v2094_v32 = vor.u32 %v2317_v28, %v2093_v42  ;;  %v2312_v59 = vld [vmem:[#allocation5 + $0x134] sm:$0xf]  ;;  %v2071_v4 = vld [vmem:[#allocation5 + $0x128] sm:$0xf0] }
 0x121   :  { %v2082_v62 = vor.u32 %v2312_v59, %v2079_v60  ;;  %v1010_v9 = vld.sshfl [vmem:[#allocation1 + $0x28] sm:$0xff pattern:$0x73625140] }
 0x123   :  { %1146 = vmatpush.bf16.msrb.mxu2 %v2126_v0  ;;  %1207 = vmatpush.bf16.msra.mxu1 %v1144_v51  ;;  %v2069_v0 = vld [vmem:[#allocation5 + $0x120] sm:$0xf] }
 0x124   :  { %1183 = vmatpush.bf16.msra.mxu0 %v2122_v16  ;;  %v2070_v8 = vor.u32 %v2311_v2, %v2069_v0 }
 0x125   :  { %v616_v15 = vld.sshfl [vmem:[#allocation1] sm:$0xff pattern:$0x73625140]  ;;  %v617_v20 = vld.sshfl [vmem:[#allocation1 + $0x8] sm:$0xff pattern:$0x73625140] }
 0x126   :  { %992 = vst [vmem:[#allocation1] ss:$4 sm:$0xff] %v2897_v6  ;;  %v2111_v6 = vld [vmem:[#allocation5 + $0x178] sm:$0xf0]  ;;  %v626_v35 = vpack.c.bf16 %v616_v15, %v616_v15  ;;  %v627_v38 = vpack.c.bf16 %v617_v20, %v617_v20 }
 0x127   :  { %994 = vst [vmem:[#allocation1 + $0x1] ss:$4 sm:$0xff] %v2899_v7  ;;  %1147 = vmatpush.bf16.msrb.mxu2 %v2118_v25  ;;  %v2114_v7 = vor.u32 %v2320_v34, %v2111_v6 }
 0x128   :  { %996 = vst [vmem:[#allocation1 + $0x2] ss:$4 sm:$0xff] %v2912_v43  ;;  %v2318_v43 = vld [vmem:[#allocation5 + $0x164] sm:$0xf] }
 0x129   :  { %998 = vst [vmem:[#allocation1 + $0x3] ss:$4 sm:$0xff] %v2917_v50  ;;  %v538_v50 = vsel %vm514_vm2, %v2974_v21, %v511_v30  ;;  %1184 = vmatpush.bf16.msra.mxu0 %v2114_v7  ;;  %v2106_v47 = vor.u32 %v2318_v43, %v2103_v41  ;;  %v2098_v21 = vor.u32 %v2316_v48, %v2095_v49  ;;  %v2085_v30 = vld [vmem:[#allocation5 + $0x140] sm:$0xf] }
 0x12a   :  { %v539_v53 = vrot.slane %v538_v50, 2  ;;  %v2086_v57 = vor.u32 %v2315_v54, %v2085_v30 }
 0x12b   :  { %1148 = vmatpush.bf16.msrb.mxu2 %v2110_v24 }
 0x12d   :  { %761 = vmatmul.bf16.gmra.mxu2 %v626_v35  ;;  %1988 = vmatmul.msk.bf16.gmra.mxu3 %vm735_vm5, %v627_v38 }
 0x12e   :  { %797 = vmatmul.bf16.gmra.mxu0 %v626_v35  ;;  %1990 = vmatmul.msk.bf16.gmra.mxu1 %vm735_vm5, %v627_v38 }
 0x12f   :  { %1149 = vmatpush.bf16.msrb.mxu2 %v2102_v19  ;;  %1185 = vmatpush.bf16.msra.mxu0 %v2106_v47 }
 0x130   :  { %v1007_v45 = vld.sshfl [vmem:[#allocation1] sm:$0xff pattern:$0x73625140]  ;;  %v1008_v46 = vld.sshfl [vmem:[#allocation1 + $0x8] sm:$0xff pattern:$0x73625140] }
 0x131   :  { %1011 = vst [vmem:[#allocation1] ss:$4 sm:$0xff] %v2941_v29  ;;  %v2090_v29 = vor.u32 %v2314_v55, %v2087_v56  ;;  %v1024_v11 = vpack.c.bf16 %v1010_v9, %v1008_v46  ;;  %v1224_v56 = vld [vmem:[#allocation7] sm:$0x3] }
 0x132   :  { %1012 = vst [vmem:[#allocation1 + $0x1] ss:$4 sm:$0xff] %v2945_v31  ;;  %v571_v31 = vpack.c.bf16 %v2947_v36, %v2929_v22  ;;  %v2074_v22 = vor.u32 %v2310_v3, %v2071_v4  ;;  %v574_v36 = vpack.c.bf16 %v2962_v37, %v2962_v37  ;;  %v3034_v60 = vperm.slane %v1224_v56, 1 }
 0x133   :  { %1013 = vst [vmem:[#allocation1 + $0x2] ss:$4 sm:$0xff] %v2986_v44  ;;  %1150 = vmatpush.bf16.msrb.mxu2 %v2094_v32  ;;  %1186 = vmatpush.bf16.msra.mxu0 %v2098_v21  ;;  %v572_v44 = vpack.c.bf16 %v2949_v17, %v2931_v23  ;;  %v573_v23 = vpack.c.bf16 %v2960_v63, %v2960_v63  ;;  %v1009_v17 = vld.sshfl [vmem:[#allocation1 + $0x20] sm:$0xff pattern:$0x73625140] }
 0x134   :  { %1014 = vst [vmem:[#allocation1 + $0x3] ss:$4 sm:$0xff] %v539_v53  ;;  %v1023_v10 = vpack.c.bf16 %v1009_v17, %v1007_v45 }
 0x137   :  { %1151 = vmatpush.bf16.msrb.mxu2 %v2086_v57  ;;  %1187 = vmatpush.bf16.msra.mxu0 %v2090_v29 }
 0x13b   :  { %1152 = vmatpush.bf16.msrb.mxu2 %v2078_v61  ;;  %1188 = vmatpush.bf16.msra.mxu0 %v2082_v62  ;;  %v1015_v63 = vld.sshfl [vmem:[#allocation1] sm:$0xff pattern:$0x73625140]  ;;  %v1016_v12 = vld.sshfl [vmem:[#allocation1 + $0x8] sm:$0xff pattern:$0x73625140] }
 0x13c   :  { %v1025_v1 = vpack.c.bf16 %v1015_v63, %v1015_v63  ;;  %v1026_v37 = vpack.c.bf16 %v1016_v12, %v1016_v12  ;;  %v2165_v61 = vld [vmem:[%s3162_s5 + $0x38] sm:$0xf]  ;;  %v2335_v62 = vld [vmem:[%s3162_s5 + $0x38] sm:$0x30] }
 0x13d   :  { %928 = vmatmul.bf16.vlgmr.msra.gmra.mxu2 %v571_v31  ;;  %2063 = vmatmul.msk.bf16.vlgmr.msra.gmra.mxu3 %vm735_vm5, %v572_v44 }
 0x13e   :  { %964 = vmatmul.bf16.vlgmr.msrb.gmra.mxu0 %v571_v31  ;;  %2065 = vmatmul.msk.bf16.vlgmr.msrb.gmra.mxu1 %vm735_vm5, %v572_v44 }
 0x13f   :  { %1153 = vmatpush.bf16.msrb.mxu2 %v2070_v8  ;;  %1189 = vmatpush.bf16.msra.mxu0 %v2074_v22  ;;  %v2166_v8 = vor.u32 %v2335_v62, %v2165_v61 }
 0x141   :  { %v1402_v9 = vsel %vm520_vm4, %v2166_v8, 0 }
 0x143   :  { %1408 = vmatpush.bf16.msra.mxu2 %v1402_v9 }
 0x14d   :  { %933 = vmatmul.bf16.gmra.mxu2 %v573_v23  ;;  %2064 = vmatmul.msk.bf16.gmra.mxu3 %vm735_vm5, %v574_v36 }
 0x14e   :  { %969 = vmatmul.bf16.gmra.mxu0 %v573_v23  ;;  %2066 = vmatmul.msk.bf16.gmra.mxu1 %vm735_vm5, %v574_v36  ;;  %v3043_v36 = vperm.slane %v1224_v56, 0 }
 0x15d   :  { %1154 = vmatmul.bf16.vlgmr.msrb.gmra.mxu2 %v1023_v10  ;;  %2139 = vmatmul.msk.bf16.vlgmr.msrb.gmra.mxu3 %vm735_vm5, %v1024_v11 }
 0x15e   :  { %1190 = vmatmul.bf16.vlgmr.msra.gmra.mxu0 %v1023_v10  ;;  %2141 = vmatmul.msk.bf16.vlgmr.msra.gmra.mxu1 %vm735_vm5, %v1024_v11 }
 0x16d   :  { %1159 = vmatmul.bf16.gmra.mxu2 %v1025_v1  ;;  %2140 = vmatmul.msk.bf16.gmra.mxu3 %vm735_vm5, %v1026_v37 }
 0x16e   :  { %1195 = vmatmul.bf16.gmra.mxu0 %v1025_v1  ;;  %2142 = vmatmul.msk.bf16.gmra.mxu1 %vm735_vm5, %v1026_v37 }
 0x19b   :  { %v793_v5 = vpop.f32.mrf.mxu0  ;;  %v811_v13 = vpop.f32.mrf.mxu1 }
 0x19c   :  { %v812_v21 = vadd.f32 %v811_v13, %v793_v5  ;;  %v2334_v5 = vld [vmem:[%s3162_s5 + $0x30] sm:$0xff]  ;;  %v2182_v13 = vld [vmem:[%s3162_s5 + $0x18] sm:$0xf] }
 0x19d   :  { %1409 = vmatpush.bf16.msra.mxu2 %v2334_v5 }
 0x1a0   :  { %v757_v14 = vpop.f32.mrf.mxu2  ;;  %v775_v15 = vpop.f32.mrf.mxu3 }
 0x1a1   :  { %v776_v57 = vadd.f32 %v775_v15, %v757_v14  ;;  %v2331_v14 = vld [vmem:[%s3162_s5 + $0x18] sm:$0x30] }
 0x1a3   :  { %v795_v20 = vpop.f32.mrf.mxu0  ;;  %v813_v25 = vpop.f32.mrf.mxu1 }
 0x1a4   :  { %v814_v26 = vadd.f32 %v813_v25, %v795_v20  ;;  %v2183_v25 = vor.u32 %v2331_v14, %v2182_v13 }
 0x1a8   :  { %v759_v27 = vpop.f32.mrf.mxu2  ;;  %v777_v51 = vpop.f32.mrf.mxu3 }
 0x1a9   :  { %v778_v12 = vadd.f32 %v777_v51, %v759_v27 }
 0x1ab   :  { %v798_v16 = vpop.f32.mrf.mxu0  ;;  %v816_v33 = vpop.f32.mrf.mxu1 }
 0x1ac   :  { %v3024_v52 = vadd.f32 %v816_v33, %v798_v16  ;;  %v1444_v16 = vsel %vm520_vm4, %v2183_v25, 0  ;;  %v2333_v33 = vld [vmem:[%s3162_s5 + $0x28] sm:$0xff] }
 0x1ad   :  { %1450 = vmatpush.bf16.msra.mxu3 %v1444_v16  ;;  %1410 = vmatpush.bf16.msra.mxu2 %v2333_v33 }
 0x1b0   :  { %v762_v34 = vpop.f32.mrf.mxu2  ;;  %v780_v6 = vpop.f32.mrf.mxu3 }
 0x1b1   :  { %v3026_v35 = vadd.f32 %v780_v6, %v762_v34 }
 0x1b3   :  { %v800_v38 = vpop.f32.mrf.mxu0  ;;  %v818_v24 = vpop.f32.mrf.mxu1 }
 0x1b4   :  { %v2330_v24 = vld [vmem:[%s3162_s5 + $0x10] sm:$0xff] }
 0x1b5   :  { %1451 = vmatpush.bf16.msra.mxu3 %v2330_v24 }
 0x1b8   :  { %v764_v7 = vpop.f32.mrf.mxu2  ;;  %v782_v39 = vpop.f32.mrf.mxu3 }
 0x1bb   :  { %v965_v40 = vpop.f32.mrf.mxu0  ;;  %v983_v43 = vpop.f32.mrf.mxu1 }
 0x1bc   :  { %v966_v30 = vadd.f32 %v965_v40, %v812_v21 }
 0x1be   :  { %v984_v18 = vadd.f32 %v983_v43, %v966_v30 }
 0x1c0   :  { %v929_v41 = vpop.f32.mrf.mxu2  ;;  %v947_v50 = vpop.f32.mrf.mxu3 }
 0x1c1   :  { %v930_v31 = vadd.f32 %v929_v41, %v776_v57 }
 0x1c3   :  { %v967_v19 = vpop.f32.mrf.mxu0  ;;  %v985_v42 = vpop.f32.mrf.mxu1  ;;  %v948_v22 = vadd.f32 %v947_v50, %v930_v31 }
 0x1c4   :  { %v968_v0 = vadd.f32 %v967_v19, %v814_v26 }
 0x1c6   :  { %v986_v1 = vadd.f32 %v985_v42, %v968_v0 }
 0x1c8   :  { %v931_v28 = vpop.f32.mrf.mxu2  ;;  %v949_v45 = vpop.f32.mrf.mxu3 }
 0x1c9   :  { %v932_v26 = vadd.f32 %v931_v28, %v778_v12 }
 0x1cb   :  { %v970_v46 = vpop.f32.mrf.mxu0  ;;  %v3028_v47 = vpop.f32.mrf.mxu1  ;;  %v950_v41 = vadd.f32 %v949_v45, %v932_v26 }
 0x1cc   :  { %v971_v7 = vadd.f32 %v970_v46, %v3024_v52  ;;  %v2332_v52 = vld [vmem:[%s3162_s5 + $0x20] sm:$0xff] }
 0x1cd   :  { %1411 = vmatpush.bf16.msra.mxu2 %v2332_v52 }
 0x1ce   :  { %v989_v56 = vadd.f32 %v3028_v47, %v971_v7 }
 0x1d0   :  { %v3030_v48 = vpop.f32.mrf.mxu2  ;;  %v3032_v49 = vpop.f32.mrf.mxu3 }
 0x1d1   :  { %v935_v57 = vadd.f32 %v3030_v48, %v3026_v35  ;;  %v2328_v35 = vld [vmem:[%s3162_s5] sm:$0xff] }
 0x1d3   :  { %v972_v53 = vpop.f32.mrf.mxu0  ;;  %v990_v32 = vpop.f32.mrf.mxu1  ;;  %v953_v47 = vadd.f32 %v3032_v49, %v935_v57 }
 0x1d8   :  { %v936_v54 = vpop.f32.mrf.mxu2  ;;  %v954_v55 = vpop.f32.mrf.mxu3 }
 0x1d9   :  { %v2329_v55 = vld [vmem:[%s3162_s5 + $0x8] sm:$0xff] }
 0x1da   :  { %1452 = vmatpush.bf16.msra.mxu3 %v2329_v55 }
 0x1db   :  { %v1191_v29 = vpop.f32.mrf.mxu0  ;;  %v1209_v58 = vpop.f32.mrf.mxu1 }
 0x1dc   :  { %v1210_v59 = vadd.f32 %v1209_v58, %v1191_v29 }
 0x1de   :  { %v1219_v44 = vadd.f32 %v1210_v59, %v984_v18  ;;  %1453 = vmatpush.bf16.msra.mxu3 %v2328_v35 }
 0x1e0   :  { %v1231_v2 = vadd.f32 %v3034_v60, %v1219_v44  ;;  %v1155_v3 = vpop.f32.mrf.mxu2  ;;  %v1173_v4 = vpop.f32.mrf.mxu3 }
 0x1e1   :  { %v1174_v23 = vadd.f32 %v1173_v4, %v1155_v3 }
 0x1e2   :  { %v1237_v17 = vmax.f32 %v1231_v2, 0.0 }
 0x1e3   :  { %v1218_v10 = vadd.f32 %v1174_v23, %v948_v22  ;;  %v1193_v11 = vpop.f32.mrf.mxu0  ;;  %v1211_v63 = vpop.f32.mrf.mxu1 }
 0x1e4   :  { %v1212_v37 = vadd.f32 %v1211_v63, %v1193_v11  ;;  %v1243_v15 = vmin.f32 %v1237_v17, 6.0 }
 0x1e5   :  { %v1230_v20 = vadd.f32 %v3043_v36, %v1218_v10 }
 0x1e6   :  { %v1221_v27 = vadd.f32 %v1212_v37, %v986_v1  ;;  %v1254_v39 = vrot.slane %v1243_v15, 6  ;;  %v2207_v15 = vld [vmem:[%s3162_s5 + $0x58] sm:$0xf] }
 0x1e7   :  { %v1236_v51 = vmax.f32 %v1230_v20, 0.0  ;;  %v2339_v20 = vld [vmem:[%s3162_s5 + $0x58] sm:$0x30] }
 0x1e8   :  { %v1233_v34 = vadd.f32 %v3034_v60, %v1221_v27  ;;  %v1157_v6 = vpop.f32.mrf.mxu2  ;;  %v1175_v38 = vpop.f32.mrf.mxu3 }
 0x1e9   :  { %v1242_v40 = vmin.f32 %v1236_v51, 6.0  ;;  %v1176_v43 = vadd.f32 %v1175_v38, %v1157_v6 }
 0x1ea   :  { %v1239_v50 = vmax.f32 %v1233_v34, 0.0  ;;  %v2208_v34 = vor.u32 %v2339_v20, %v2207_v15  ;;  %v2341_v20 = vld [vmem:[%s3164_s7 + $0x8] sm:$0xff] }
 0x1eb   :  { %v1257_v19 = vsel %vm512_vm1, %v1242_v40, %v1254_v39  ;;  %v1258_v42 = vsel %vm514_vm2, %v1242_v40, %v1254_v39  ;;  %v1260_v28 = vsel %vm517_vm3, %v1242_v40, %v1254_v39  ;;  %v1262_v53 = vsel %vm520_vm4, %v1254_v39, %v1242_v40  ;;  %v1196_v32 = vpop.f32.mrf.mxu0  ;;  %v1214_v21 = vpop.f32.mrf.mxu1 }
 0x1ec   :  { %v1259_v46 = vrot.slane %v1258_v42, 2  ;;  %v1261_v30 = vrot.slane %v1260_v28, 4  ;;  %v1263_v54 = vrot.slane %v1262_v53, 6  ;;  %v1290_v45 = vrot.slane %v1257_v19, 2  ;;  %v2338_v28 = vld [vmem:[%s3162_s5 + $0x50] sm:$0xff] }
 0x1ed   :  { %v1220_v29 = vadd.f32 %v1176_v43, %v950_v41  ;;  %v1215_v58 = vadd.f32 %v1214_v21, %v1196_v32  ;;  %v1245_v44 = vmin.f32 %v1239_v50, 6.0  ;;  %v1506_v43 = vsel %vm520_vm4, %v2208_v34, 0 }
 0x1ee   :  { %v1291_v18 = vrot.slane %v1259_v46, 2  ;;  %v1292_v59 = vrot.slane %v1261_v30, 2  ;;  %v1293_v31 = vrot.slane %v1263_v54, 2  ;;  %v1314_v0 = vmax.f32 %v1257_v19, %v1290_v45  ;;  %1512 = vmatpush.bf16.msrb.mxu2 %v1506_v43  ;;  %v2337_v45 = vld [vmem:[%s3162_s5 + $0x48] sm:$0xff] }
 0x1ef   :  { %v1232_v61 = vadd.f32 %v3043_v36, %v1220_v29  ;;  %v1223_v62 = vadd.f32 %v1215_v58, %v989_v56  ;;  %v1255_v11 = vrot.slane %v1245_v44, 6 }
 0x1f0   :  { %v1315_v2 = vmax.f32 %v1259_v46, %v1291_v18  ;;  %v1316_v3 = vmax.f32 %v1261_v30, %v1292_v59  ;;  %v1317_v4 = vmax.f32 %v1263_v54, %v1293_v31  ;;  %v1160_v8 = vpop.f32.mrf.mxu2  ;;  %v1178_v22 = vpop.f32.mrf.mxu3 }
 0x1f1   :  { %v1238_v48 = vmax.f32 %v1232_v61, 0.0  ;;  %v1235_v23 = vadd.f32 %v3034_v60, %v1223_v62  ;;  %v1179_v17 = vadd.f32 %v1178_v22, %v1160_v8 }
 0x1f2   :  { %v1326_v9 = vmax.f32 %v1314_v0, %v1315_v2  ;;  %v3084_v10 = vmax.f32 %v1316_v3, %v1317_v4  ;;  %1513 = vmatpush.bf16.msrb.mxu2 %v2338_v28  ;;  %v2336_v0 = vld [vmem:[%s3162_s5 + $0x40] sm:$0xff] }
 0x1f3   :  { %v1244_v63 = vmin.f32 %v1238_v48, 6.0  ;;  %v1241_v12 = vmax.f32 %v1235_v23, 0.0  ;;  %v1222_v1 = vadd.f32 %v1179_v17, %v953_v47  ;;  %v1198_v37 = vpop.f32.mrf.mxu0  ;;  %v1216_v5 = vpop.f32.mrf.mxu1  ;;  %v1543_v17 = vld [vmem:[%s3164_s7 + $0x10] sm:$0xf] }
 0x1f4   :  { %1336 = vst [vmem:[#allocation1] ss:$4 sm:$0xff] %v1326_v9  ;;  %v2237_v9 = vld [vmem:[%s3164_s7 + $0x38] sm:$0xf] }
 0x1f5   :  { %1338 = vst [vmem:[#allocation1 + $0x1] ss:$4 sm:$0xff] %v3084_v10  ;;  %v1264_v13 = vsel %vm512_vm1, %v1244_v63, %v1255_v11  ;;  %v1265_v49 = vsel %vm514_vm2, %v1244_v63, %v1255_v11  ;;  %v1267_v60 = vsel %vm517_vm3, %v1244_v63, %v1255_v11  ;;  %v1269_v14 = vsel %vm520_vm4, %v1255_v11, %v1244_v63  ;;  %v2214_v63 = vld [vmem:[%s3164_s7 + $0x24] sm:$0xf] }
 0x1f6   :  { %v1266_v25 = vrot.slane %v1265_v49, 2  ;;  %v1268_v26 = vrot.slane %v1267_v60, 4  ;;  %v1270_v27 = vrot.slane %v1269_v14, 6  ;;  %v1294_v51 = vrot.slane %v1264_v13, 2  ;;  %1514 = vmatpush.bf16.msrb.mxu2 %v2337_v45  ;;  %v2380_v45 = vld [vmem:[#allocation10] ss:$0 sm:$0xff] }
 0x1f7   :  { %v1247_v16 = vmin.f32 %v1241_v12, 6.0  ;;  %v1234_v33 = vadd.f32 %v3043_v36, %v1222_v1  ;;  %v1647_v11 = vunpack.c.l.b16 %v2237_v9  ;;  %v1565_v1 = vunpack.c.l.b16 %v2214_v63 }
 0x1f8   :  { %v1295_v6 = vrot.slane %v1266_v25, 2  ;;  %v1296_v38 = vrot.slane %v1268_v26, 2  ;;  %v1297_v24 = vrot.slane %v1270_v27, 2  ;;  %v1162_v7 = vpop.f32.mrf.mxu2  ;;  %v1180_v39 = vpop.f32.mrf.mxu3  ;;  %v1318_v41 = vmax.f32 %v1264_v13, %v1294_v51  ;;  %v2344_v51 = vld [vmem:[%s3164_s7 + $0x28] sm:$0xff] }
 0x1f9   :  { %v1240_v40 = vmax.f32 %v1234_v33, 0.0  ;;  %v1256_v53 = vrot.slane %v1247_v16, 6  ;;  %v1650_v5 = vpack.c.b16 %v1647_v11, %v1647_v11  ;;  %v1568_v13 = vpack.c.b16 %v1565_v1, %v1565_v1  ;;  %v2342_v16 = vld [vmem:[%s3164_s7 + $0x14] sm:$0xff]  ;;  %v2347_v1 = vld [vmem:[%s3166_s9 + $0x8] sm:$0x30] }
 0x1fa   :  { %v1319_v50 = vmax.f32 %v1266_v25, %v1295_v6  ;;  %v1320_v19 = vmax.f32 %v1268_v26, %v1296_v38  ;;  %v1321_v42 = vmax.f32 %v1270_v27, %v1297_v24  ;;  %1515 = vmatpush.bf16.msrb.mxu2 %v2336_v0  ;;  %v2345_v25 = vld [vmem:[%s3164_s7 + $0x30] sm:$0xff]  ;;  %v2343_v26 = vld [vmem:[%s3164_s7 + $0x1c] sm:$0xff] }
 0x1fb   :  { %v1246_v36 = vmin.f32 %v1240_v40, 6.0  ;;  %v1657_v14 = vsel %vm1575_vm7, %v1650_v5, 0  ;;  %v1577_v15 = vsel %vm1575_vm7, %v1568_v13, 0  ;;  %v2340_v27 = vld [vmem:[%s3164_s7] sm:$0xff]  ;;  %v2379_v6 = vld [vmem:[#allocation8] ss:$0 sm:$0xff] }
 0x1fc   :  { %v1328_v32 = vmax.f32 %v1318_v41, %v1319_v50  ;;  %v1329_v21 = vmax.f32 %v1320_v19, %v1321_v42  ;;  %1664 = vmatpush.bf16.msrb.mxu1 %v1657_v14  ;;  %1584 = vmatpush.bf16.msrb.mxu3 %v1577_v15  ;;  %s2568_s7 = smov 125   ;;  %v2574_v5 = vmov 65535   ;;  %v2346_v14 = vld [vmem:[%s3166_s9] sm:$0xff] }
 0x1fd   :  { %v1271_v52 = vsel %vm512_vm1, %v1246_v36, %v1256_v53  ;;  %v1272_v46 = vsel %vm514_vm2, %v1246_v36, %v1256_v53  ;;  %v1274_v30 = vsel %vm517_vm3, %v1246_v36, %v1256_v53  ;;  %v1276_v54 = vsel %vm520_vm4, %v1256_v53, %v1246_v36 }
 0x1fe   :  { %1340 = vst [vmem:[#allocation1 + $0x2] ss:$4 sm:$0xff] %v1328_v32  ;;  %v1273_v55 = vrot.slane %v1272_v46, 2  ;;  %v1275_v56 = vrot.slane %v1274_v30, 4  ;;  %v1277_v57 = vrot.slane %v1276_v54, 6  ;;  %v1298_v29 = vrot.slane %v1271_v52, 2 }
 0x1ff   :  { %1342 = vst [vmem:[#allocation1 + $0x3] ss:$4 sm:$0xff] %v1329_v21  ;;  %v1780_v13 = vsel %vm1779_vm9, 4294967295, %v2574_v5  ;;  %vm1775_vm1 = vcmask 220160  }
 0x200   :  { %v1299_v58 = vrot.slane %v1273_v55, 2  ;;  %v1300_v18 = vrot.slane %v1275_v56, 2  ;;  %v1301_v59 = vrot.slane %v1277_v57, 2  ;;  %v1322_v31 = vmax.f32 %v1271_v52, %v1298_v29  ;;  %1665 = vmatpush.bf16.msrb.mxu1 %v2345_v25  ;;  %1585 = vmatpush.bf16.msrb.mxu3 %v2343_v26 }
 0x202   :  { %v1323_v44 = vmax.f32 %v1273_v55, %v1299_v58  ;;  %v1324_v61 = vmax.f32 %v1275_v56, %v1300_v18  ;;  %v1325_v62 = vmax.f32 %v1277_v57, %v1301_v59 }
 0x204   :  { %v1330_v2 = vmax.f32 %v1322_v31, %v1323_v44  ;;  %v1331_v3 = vmax.f32 %v1324_v61, %v1325_v62  ;;  %1666 = vmatpush.bf16.msrb.mxu1 %v2344_v51  ;;  %1586 = vmatpush.bf16.msrb.mxu3 %v2342_v16 }
 0x206   :  { %v1343_v4 = vld.sshfl [vmem:[#allocation1] sm:$0xff pattern:$0x73625140] }
 0x207   :  { %v1345_v8 = vpack.c.bf16 %v1343_v4, %v1343_v4  ;;  %1355 = vst [vmem:[#allocation1] ss:$4 sm:$0xff] %v3084_v10  ;;  %v1601_v10 = vunpack.c.l.b16 %v1543_v17 }
 0x208   :  { %1357 = vst [vmem:[#allocation1 + $0x1] ss:$4 sm:$0xff] %v1328_v32 }
 0x209   :  { %2184 = vmatmul.msk.bf16.vlgmr.msra.gmra.mxu3 %vm1397_vm6, %v1345_v8  ;;  %1359 = vst [vmem:[#allocation1 + $0x2] ss:$4 sm:$0xff] %v1329_v21  ;;  %v1604_v37 = vpack.c.b16 %v1601_v10, %v1601_v10 }
 0x20a   :  { %1361 = vst [vmem:[#allocation1 + $0x3] ss:$4 sm:$0xff] %v1330_v2 }
 0x20b   :  { %v1611_v60 = vsel %vm1575_vm7, %v1604_v37, 0 }
 0x20c   :  { %1618 = vmatpush.bf16.msrb.mxu0 %v1611_v60 }
 0x210   :  { %1619 = vmatpush.bf16.msrb.mxu0 %v2341_v20 }
 0x211   :  { %v1362_v22 = vld.sshfl [vmem:[#allocation1] sm:$0xff pattern:$0x73625140] }
 0x212   :  { %v1364_v35 = vpack.c.bf16 %v1362_v22, %v1362_v22  ;;  %1460 = vst [vmem:[#allocation1] ss:$4 sm:$0xff] %v1328_v32 }
 0x213   :  { %1462 = vst [vmem:[#allocation1 + $0x1] ss:$4 sm:$0xff] %v1329_v21 }
 0x214   :  { %2167 = vmatmul.msk.bf16.vlgmr.msra.gmra.mxu2 %vm1397_vm6, %v1364_v35  ;;  %1464 = vst [vmem:[#allocation1 + $0x2] ss:$4 sm:$0xff] %v1330_v2  ;;  %1620 = vmatpush.bf16.msrb.mxu0 %v2340_v27 }
 0x215   :  { %1466 = vst [vmem:[#allocation1 + $0x3] ss:$4 sm:$0xff] %v1331_v3 }
 0x21c   :  { %v1467_v47 = vld.sshfl [vmem:[#allocation1] sm:$0xff pattern:$0x73625140] }
 0x21d   :  { %v1469_v48 = vpack.c.bf16 %v1467_v47, %v1467_v47 }
 0x224   :  { %2209 = vmatmul.msk.bf16.vlgmr.msrb.gmra.mxu2 %vm1397_vm6, %v1469_v48 }
 0x28c   :  { %v1455_v23 = vpop.f32.mrf.mxu3 }
 0x294   :  { %v1457_v12 = vpop.f32.mrf.mxu3 }
 0x295   :  { %v2253_v12 = vld [vmem:[%s3166_s9 + $0x8] sm:$0xf]  ;;  %s2575_s9 = smov [#allocation13]  }
 0x296   :  { %v2254_v37 = vor.u32 %v2347_v1, %v2253_v12  ;;  %s1804_s29 = sshll.u32 %s2575_s9, 4  ;;  %s1805_s29 = int_to_ptr.vmem [resolvable:$true] %s1804_s29 }
 0x297   :  { %v1413_v49 = vpop.f32.mrf.mxu2 }
 0x298   :  { %v1456_v34 = vadd.f32 %v1455_v23, %v1413_v49  ;;  %v1781_v49 = vsel %vm520_vm4, %v1780_v13, 0 }
 0x299   :  { %v1783_v60 = vand.u32 %v2254_v37, %v1781_v49 }
 0x29b   :  { %1791 = vmatpush.bf16.msra.mxu2 %v1783_v60 }
 0x29f   :  { %v1415_v33 = vpop.f32.mrf.mxu2  ;;  %1792 = vmatpush.bf16.msra.mxu2 %v2346_v14 }
 0x2a7   :  { %v1517_v38 = vpop.f32.mrf.mxu2 }
 0x2a8   :  { %v1521_v24 = vadd.f32 %v1517_v38, %v1456_v34 }
 0x2aa   :  { %v1526_v7 = vadd.f32 %v2379_v6, %v1521_v24 }
 0x2ac   :  { %v1527_v39 = vmax.f32 %v1526_v7, 0.0 }
 0x2ae   :  { %v1528_v40 = vmin.f32 %v1527_v39, 6.0 }
 0x2af   :  { %v1519_v43 = vpop.f32.mrf.mxu2 }
 0x2b0   :  { %v1530_v41 = vrot.slane %v1528_v40, 2  ;;  %1533 = vst [vmem:[#allocation1] ss:$4 sm:$0xff] %v1528_v40  ;;  %v1531_v50 = vrot.slane %v1528_v40, 4  ;;  %v1532_v28 = vrot.slane %v1528_v40, 6 }
 0x2b2   :  { %1535 = vst [vmem:[#allocation1 + $0x1] ss:$4 sm:$0xff] %v1530_v41 }
 0x2b9   :  { %v1536_v19 = vld.sshfl [vmem:[#allocation1] sm:$0xff pattern:$0x73625140] }
 0x2ba   :  { %v1538_v42 = vpack.c.bf16 %v1536_v19, %v1536_v19  ;;  %1544 = vst [vmem:[#allocation1] ss:$4 sm:$0xff] %v1530_v41 }
 0x2bb   :  { %1546 = vst [vmem:[#allocation1 + $0x1] ss:$4 sm:$0xff] %v1531_v50 }
 0x2bc   :  { %2232 = vmatmul.msk.bf16.vlgmr.msrb.gmra.mxu0 %vm1571_vm8, %v1538_v42 }
 0x2c2   :  { %v1547_v53 = vld.sshfl [vmem:[#allocation1] sm:$0xff pattern:$0x73625140] }
 0x2c3   :  { %v1549_v36 = vpack.c.bf16 %v1547_v53, %v1547_v53  ;;  %1626 = vst [vmem:[#allocation1] ss:$4 sm:$0xff] %v1531_v50 }
 0x2c4   :  { %1628 = vst [vmem:[#allocation1 + $0x1] ss:$4 sm:$0xff] %v1532_v28  ;;  %v2381_v28 = vld [vmem:[#allocation11] ss:$0 sm:$0xff] }
 0x2c5   :  { %2223 = vmatmul.msk.bf16.vlgmr.msrb.gmra.mxu3 %vm1571_vm8, %v1549_v36 }
 0x2cb   :  { %v1629_v32 = vld.sshfl [vmem:[#allocation1] sm:$0xff pattern:$0x73625140] }
 0x2cc   :  { %v1631_v21 = vpack.c.bf16 %v1629_v32, %v1629_v32 }
 0x2ce   :  { %2246 = vmatmul.msk.bf16.vlgmr.msrb.gmra.mxu1 %vm1571_vm8, %v1631_v21 }
 0x339   :  { %v1622_v52 = vpop.f32.mrf.mxu0 }
 0x341   :  { %v1624_v46 = vpop.f32.mrf.mxu0 }
 0x348   :  { %v1588_v30 = vpop.f32.mrf.mxu3 }
 0x349   :  { %v1623_v54 = vadd.f32 %v1622_v52, %v1588_v30 }
 0x34b   :  { %v1668_v55 = vpop.f32.mrf.mxu1 }
 0x34c   :  { %v1672_v56 = vadd.f32 %v1668_v55, %v1623_v54 }
 0x34e   :  { %v1677_v57 = vadd.f32 %v2380_v45, %v1672_v56 }
 0x350   :  { %v1678_v29 = vmax.f32 %v1677_v57, 0.0  ;;  %v1590_v58 = vpop.f32.mrf.mxu3 }
 0x352   :  { %v1679_v18 = vmin.f32 %v1678_v29, 6.0 }
 0x353   :  { %v1670_v59 = vpop.f32.mrf.mxu1 }
 0x354   :  { %1683 = vrot.lane.b32.xlu0 %v1679_v18, %s2568_s7  ;;  %v1681_v31 = vrot.slane %v1679_v18, 2 }
 0x356   :  { %1693 = vrot.lane.b32.xlu1 %v1681_v31, %s2568_s7  ;;  %v1687_v44 = vmax.f32 %v1679_v18, %v1681_v31 }
 0x35c   :  { %1689 = vrot.lane.b32.xlu0 %v1687_v44, %s2568_s7 }
 0x3c6   :  { %v1684_v61 = vpop.permute.xlu0 %1683 }
 0x3c7   :  { %v1686_v62 = vmax.f32 %v1679_v18, %v1684_v61 }
 0x3c8   :  { %v1694_v23 = vpop.permute.xlu1 %1693 }
 0x3c9   :  { %1698 = vst [vmem:[#allocation1] ss:$4 sm:$0xff] %v1686_v62  ;;  %v1696_v17 = vmax.f32 %v1681_v31, %v1694_v23 }
 0x3ce   :  { %v1690_v4 = vpop.permute.xlu0 %1689 }
 0x3cf   :  { %v1692_v8 = vmax.f32 %v1687_v44, %v1690_v4 }
 0x3d0   :  { %v1699_v0 = vld.sshfl [vmem:[#allocation1] sm:$0xff pattern:$0x73625140] }
 0x3d1   :  { %1703 = vst [vmem:[#allocation1] ss:$4 sm:$0xff] %v1679_v18 }
 0x3d8   :  { %v1704_v2 = vld.sshfl [vmem:[#allocation1] sm:$0xff pattern:$0x73625140] }
 0x3d9   :  { %v2364_v3 = vpack.i.bf16 %v1704_v2, %v1699_v0  ;;  %1708 = vst [vmem:[#allocation1] ss:$4 sm:$0xff] %v1687_v44 }
 0x3db   :  { %2365 = vrot.lane.b32.xlu1 %v2364_v3, %s2569_s4 }
 0x3e0   :  { %v1709_v22 = vld.sshfl [vmem:[#allocation1] sm:$0xff pattern:$0x73625140] }
 0x3e1   :  { %1710 = vrot.lane.b32.xlu2 %v1709_v22, %s2570_s24  ;;  %1714 = vst [vmem:[#allocation1] ss:$4 sm:$0xff] %v1692_v8 }
 0x3e8   :  { %v1715_v35 = vld.sshfl [vmem:[#allocation1] sm:$0xff pattern:$0x73625140] }
 0x3e9   :  { %1719 = vst [vmem:[#allocation1] ss:$4 sm:$0xff] %v1687_v44 }
 0x3f0   :  { %v1720_v47 = vld.sshfl [vmem:[#allocation1] sm:$0xff pattern:$0x73625140] }
 0x3f1   :  { %v2369_v48 = vpack.i.bf16 %v1720_v47, %v1715_v35  ;;  %1724 = vst [vmem:[#allocation1] ss:$4 sm:$0xff] %v1681_v31 }
 0x3f3   :  { %2370 = vrot.lane.b32.xlu2 %v2369_v48, %s2571_s25 }
 0x3f8   :  { %v1725_v9 = vld.sshfl [vmem:[#allocation1] sm:$0xff pattern:$0x73625140] }
 0x3f9   :  { %1726 = vrot.lane.b32.xlu0 %v1725_v9, %s2572_s8  ;;  %1730 = vst [vmem:[#allocation1] ss:$4 sm:$0xff] %v1696_v17 }
 0x400   :  { %v1731_v10 = vld.sshfl [vmem:[#allocation1] sm:$0xff pattern:$0x73625140] }
 0x401   :  { %1735 = vst [vmem:[#allocation1] ss:$4 sm:$0xff] %v1681_v31 }
 0x408   :  { %v1736_v11 = vld.sshfl [vmem:[#allocation1] sm:$0xff pattern:$0x73625140] }
 0x409   :  { %v2374_v63 = vpack.i.bf16 %v1736_v11, %v1731_v10 }
 0x40b   :  { %2375 = vrot.lane.b32.xlu1 %v2374_v63, %s2573_s26 }
 0x43b   :  { %v1711_v20 = vpop.permute.xlu2 %1710 }
 0x44d   :  { %v2366_v15 = vpop.permute.xlu1 %2365  ;;  %v2371_v16 = vpop.permute.xlu2 %2370 }
 0x44e   :  { %v2367_v25 = vunpack.i.l.bf16 %v2366_v15  ;;  %v2368_v26 = vunpack.i.h.bf16 %v2366_v15  ;;  %v2372_v34 = vunpack.i.l.bf16 %v2371_v16  ;;  %v2373_v38 = vunpack.i.h.bf16 %v2371_v16 }
 0x450   :  { %v1741_v27 = vsel %vm1740_vm10, %v1679_v18, %v2367_v25 }
 0x451   :  { %v1743_v51 = vsel %vm1742_vm11, %v1741_v27, %v2368_v26 }
 0x452   :  { %v1745_v33 = vsel %vm1744_vm12, %v1743_v51, %v1711_v20 }
 0x453   :  { %v1746_v6 = vsel %vm735_vm5, %v1745_v33, %v2372_v34 }
 0x454   :  { %v1748_v39 = vsel %vm1747_vm13, %v1746_v6, %v2373_v38 }
 0x46b   :  { %v1727_v24 = vpop.permute.xlu0 %1726 }
 0x46c   :  { %v1750_v41 = vsel %vm1749_vm14, %v1748_v39, %v1727_v24 }
 0x47d   :  { %v2376_v7 = vpop.permute.xlu1 %2375 }
 0x47e   :  { %v2378_v40 = vunpack.i.h.bf16 %v2376_v7  ;;  %v2377_v43 = vunpack.i.l.bf16 %v2376_v7 }
 0x480   :  { %v1752_v50 = vsel %vm1751_vm15, %v1750_v41, %v2377_v43 }
 0x481   :  { %v1754_v19 = vsel %vm1753_vm0, %v1752_v50, %v2378_v40 }
 0x482   :  { %v1755_v42 = vpack.c.bf16 %v1754_v19, %v1754_v19 }
 0x484   :  { %2255 = vmatmul.msk.bf16.vlgmr.msra.gmra.mxu2 %vm1775_vm1, %v1755_v42 }
 0x507   :  { %v1794_v53 = vpop.f32.mrf.mxu2 }
 0x508   :  { %v1795_v36 = vadd.f32 %v2381_v28, %v1794_v53 }
 0x50a   :  { %1798 = vst [vmem:[#allocation13] sm:$0x3] %v1795_v36 }
 0x50b   :  { %1809 = dma.vmem_to_hbm [thread:$0]  %s1805_s29, 32, %s1807_s3, [#allocation4]  }
 0x50f   :  { %v1796_v32 = vpop.f32.mrf.mxu2 }
 0x510   :  { %2558 = dma.done.wait [#allocation4], 32  }
 0x511   :  { %2559 = vsyncadd [#allocation4], 4294967264 }
 0x512   :  { %1814 = vsyncpa [#allocation3], 1 }
 0x513   :  { %1815 = vsyncpa [#allocation6], 1 }
 0x514   :  { %1816 = vsyncpa [#allocation9], 1 }
 0x515   :  { %1817 = vsyncpa [#allocation12], 1 }
 0x516   :  { %1818 = vsyncpa [#allocation4], 1 }

</bundles_post_ra>
